<compile_context>
chip_gen: v5e
topology: v5e:2x2
jax: 0.10.0
libtpu: 0.0.40
codegen_flags: <defaults>
</compile_context>

<pallas_src>
import jax
import jax.numpy as jnp
from jax.experimental import pallas as pl
from jax.experimental.pallas import tpu as pltpu

IN_RAW = 28 * 28      # 784 — fc1 contraction dim (un-padded; Mosaic handles K=784)
H1 = 512
H2 = 128
N_CLASSES = 10
OUT_PAD = 128         # fc3 output padded to a lane-dense 128-wide slab


def mlp_kernel(x_ref, w1_ref, b1_ref, w2_ref, b2_ref, w3_ref, b3_ref, o_ref):
    # x tile: [TB, 784] f32 streamed from HBM; cast to bf16 in-register (VPU).
    # Weights: bf16, resident across grid steps (constant index maps).
    # Biases: f32 [1, out].  All matmuls accumulate in f32 on the MXU; the
    # bias+relu epilogues run on the f32 accumulator, then cast to bf16 only
    # as the next matmul's input.
    x = x_ref[...].astype(jnp.bfloat16)                               # [TB, 784] bf16
    h1 = jnp.dot(x, w1_ref[...], preferred_element_type=jnp.float32)  # [TB, 512] f32
    h1 = jnp.maximum(h1 + b1_ref[...], 0.0).astype(jnp.bfloat16)

    h2 = jnp.dot(h1, w2_ref[...], preferred_element_type=jnp.float32)  # [TB, 128] f32
    # Dropout(p=0.3): identity at inference time (PyTorch eval semantics).
    # TODO(synk): training-mode dropout would need pltpu.prng_* mask + 1/(1-p) scale.
    h2 = jnp.maximum(h2 + b2_ref[...], 0.0).astype(jnp.bfloat16)

    out = jnp.dot(h2, w3_ref[...], preferred_element_type=jnp.float32)  # [TB, 128] f32
    o_ref[...] = (out + b3_ref[...]).astype(o_ref.dtype)                # lane-dense store


def _round_up(n, m):
    return (n + m - 1) // m * m


def _choose_batch_tiling(B, tb_max):
    """Split B as evenly as possible into 16-row-aligned tiles of <= tb_max rows.

    >= 2 tiles whenever the batch is large enough (keeps both v7x TensorCores
    busy); pad waste is bounded to < 16 rows per tile.
    """
    min_tiles = 2 if B >= 32 else 1
    n_tiles = max(pl.cdiv(B, tb_max), min_tiles)
    tb = _round_up(pl.cdiv(B, n_tiles), 16)
    b_pad = n_tiles * tb
    return tb, b_pad


def net_forward(x_nchw, params, *, tb_max=512):
    """x_nchw: [B, 1, 28, 28] float32 -> logits [B, 10] float32.

    params are in torch nn.Linear layout: w [out, in], b [out].
    """
    w1, b1, w2, b2, w3, b3 = params
    B = x_nchw.shape[0]
    x = x_nchw.reshape(B, IN_RAW).astype(jnp.float32)        # torch: x.view(-1, 784)

    # ---- one-time weight/bias prep (tiny, amortized across calls) ----------
    w1_t = w1.T.astype(jnp.bfloat16)                                             # [784, 512]
    w2_t = w2.T.astype(jnp.bfloat16)                                             # [512, 128]
    w3_t = jnp.pad(w3.T, ((0, 0), (0, OUT_PAD - N_CLASSES))).astype(jnp.bfloat16)  # [128, 128]
    b1_r = b1.reshape(1, H1).astype(jnp.float32)
    b2_r = b2.reshape(1, H2).astype(jnp.float32)
    b3_r = jnp.pad(b3.reshape(1, N_CLASSES),
                   ((0, 0), (0, OUT_PAD - N_CLASSES))).astype(jnp.float32)       # [1, 128]

    # ---- adaptive batch tiling ---------------------------------------------
    tb, b_pad = _choose_batch_tiling(B, tb_max)
    if b_pad != B:
        # Only a few (<16 per tile) zero rows; column layout/dtype of x are
        # untouched, so the activation stream itself never round-trips HBM.
        x = jnp.pad(x, ((0, b_pad - B), (0, 0)))
    grid = (b_pad // tb,)

    # Weights/biases: constant block index -> stay resident, no re-DMA per step.
    resident = lambda a: pl.BlockSpec(a.shape, lambda i: (0, 0))

    flops = 2 * b_pad * (IN_RAW * H1 + H1 * H2 + H2 * OUT_PAD)
    bytes_accessed = (
        b_pad * IN_RAW * 4                                # x (f32, streamed)
        + (IN_RAW * H1 + H1 * H2 + H2 * OUT_PAD) * 2      # weights (bf16, resident)
        + (H1 + H2 + OUT_PAD) * 4                         # biases (f32)
        + b_pad * OUT_PAD * 4                             # output (f32)
    )

    out_padded = pl.pallas_call(
        mlp_kernel,
        out_shape=jax.ShapeDtypeStruct((b_pad, OUT_PAD), jnp.float32),
        grid=grid,
        in_specs=[
            pl.BlockSpec((tb, IN_RAW), lambda i: (i, 0)),     # streamed batch tiles
            resident(w1_t), resident(b1_r),
            resident(w2_t), resident(b2_r),
            resident(w3_t), resident(b3_r),
        ],
        out_specs=pl.BlockSpec((tb, OUT_PAD), lambda i: (i, 0)),
        compiler_params=pltpu.CompilerParams(
            # Batch axis shards across TensorCores (v7x).  If a profile ever
            # shows one TC idle, switch this axis to pltpu.CORE_PARALLEL.
            dimension_semantics=("parallel",),
            vmem_limit_bytes=32 << 20,        # ~8 MiB used at tb=512; headroom for 1024
        ),
        cost_estimate=pl.CostEstimate(
            flops=flops, transcendentals=0, bytes_accessed=bytes_accessed),
    )(x, w1_t, b1_r, w2_t, b2_r, w3_t, b3_r)

    # Logits live in the first 10 lanes of the padded slab; a downstream
    # softmax/argmax could consume out_padded[:, :10] directly to skip this copy.
    return out_padded[:B, :N_CLASSES]


def init_params(key):
    """nn.Linear-style init, torch layout: w [out, in], b [out], f32."""
    def linear(key, fan_in, fan_out):
        kw, kb = jax.random.split(key)
        bound = 1.0 / jnp.sqrt(fan_in)
        w = jax.random.uniform(kw, (fan_out, fan_in), jnp.float32, -bound, bound)
        b = jax.random.uniform(kb, (fan_out,), jnp.float32, -bound, bound)
        return w, b

    k1, k2, k3 = jax.random.split(key, 3)
    w1, b1 = linear(k1, IN_RAW, H1)
    w2, b2 = linear(k2, H1, H2)
    w3, b3 = linear(k3, H2, N_CLASSES)
    return (w1, b1, w2, b2, w3, b3)


def reference_forward(x_nchw, params, *, bf16_inputs=False):
    """Pure-JAX reference.  bf16_inputs=True mirrors the kernel's matmul dtypes."""
    w1, b1, w2, b2, w3, b3 = params
    x = x_nchw.reshape(x_nchw.shape[0], IN_RAW).astype(jnp.float32)
    cast = (lambda a: a.astype(jnp.bfloat16)) if bf16_inputs else (lambda a: a)
    h = jnp.dot(cast(x), cast(w1.T), preferred_element_type=jnp.float32) + b1
    h = jnp.maximum(h, 0.0)
    h = jnp.dot(cast(h), cast(w2.T), preferred_element_type=jnp.float32) + b2
    h = jnp.maximum(h, 0.0)                       # dropout = identity (eval)
    return jnp.dot(cast(h), cast(w3.T), preferred_element_type=jnp.float32) + b3


if __name__ == "__main__":
    key = jax.random.PRNGKey(0)
    k_param, k_x = jax.random.split(key)

    params = init_params(k_param)
    x = jax.random.normal(k_x, (8, 1, 28, 28), jnp.float32)   # small MNIST-like batch

    out = net_forward(x, params)
    out = jax.block_until_ready(out)
    assert out.shape == (8, N_CLASSES), out.shape

    # Tight check against a bf16-matmul-matched reference, loose check vs pure f32.
    ref_bf16 = reference_forward(x, params, bf16_inputs=True)
    ref_f32 = reference_forward(x, params, bf16_inputs=False)
    assert jnp.allclose(out, ref_bf16, atol=2e-2, rtol=2e-2), "mismatch vs bf16 reference"
    assert jnp.allclose(out, ref_f32, atol=5e-2, rtol=5e-2), "mismatch vs f32 reference"

    print("KERNEL_OK")
</pallas_src>

<mosaic_0001>
module attributes {stable_mosaic.version = 11 : i64} {
  func.func @mlp_kernel(%arg0: i32, %arg1: memref<16x784xf32, #tpu.memory_space<vmem>>, %arg2: memref<784x512xbf16, #tpu.memory_space<vmem>>, %arg3: memref<1x512xf32, #tpu.memory_space<vmem>>, %arg4: memref<512x128xbf16, #tpu.memory_space<vmem>>, %arg5: memref<1x128xf32, #tpu.memory_space<vmem>>, %arg6: memref<128x128xbf16, #tpu.memory_space<vmem>>, %arg7: memref<1x128xf32, #tpu.memory_space<vmem>>, %arg8: memref<16x128xf32, #tpu.memory_space<vmem>>) attributes {dimension_semantics = [#tpu.dimension_semantics<parallel>], iteration_bounds = array<i64: 1>, scalar_prefetch = 0 : i64, scratch_operands = 0 : i64, tpu.core_type = #tpu.core_type<tc>, window_params = [{transform_indices = @transform_0, window_bounds = array<i64: 16, 784>}, {pipeline_mode = #tpu.pipeline_mode<synchronous>, transform_indices = @transform_1, window_bounds = array<i64: 784, 512>}, {pipeline_mode = #tpu.pipeline_mode<synchronous>, transform_indices = @transform_2, window_bounds = array<i64: 1, 512>}, {pipeline_mode = #tpu.pipeline_mode<synchronous>, transform_indices = @transform_3, window_bounds = array<i64: 512, 128>}, {pipeline_mode = #tpu.pipeline_mode<synchronous>, transform_indices = @transform_4, window_bounds = array<i64: 1, 128>}, {pipeline_mode = #tpu.pipeline_mode<synchronous>, transform_indices = @transform_5, window_bounds = array<i64: 128, 128>}, {pipeline_mode = #tpu.pipeline_mode<synchronous>, transform_indices = @transform_6, window_bounds = array<i64: 1, 128>}, {transform_indices = @transform_7, window_bounds = array<i64: 16, 128>}]} {
    %c0 = arith.constant 0 : index
    %c0_0 = arith.constant 0 : index
    %0 = vector.load %arg1[%c0, %c0_0] : memref<16x784xf32, #tpu.memory_space<vmem>>, vector<16x784xf32>
    %1 = arith.truncf %0 : vector<16x784xf32> to vector<16x784xbf16>
    %c0_1 = arith.constant 0 : index
    %c0_2 = arith.constant 0 : index
    %2 = vector.load %arg2[%c0_1, %c0_2] : memref<784x512xbf16, #tpu.memory_space<vmem>>, vector<784x512xbf16>
    %cst = arith.constant dense<0.000000e+00> : vector<16x512xf32>
    %3 = tpu.matmul %1, %2, %cst {dimension_numbers = #tpu.dot_dimension_numbers<[1], [0], [0], [1], [0, 0, 1, 1], [], []>} : vector<16x784xbf16>, vector<784x512xbf16>, vector<16x512xf32> -> vector<16x512xf32>
    %c0_3 = arith.constant 0 : index
    %c0_4 = arith.constant 0 : index
    %4 = vector.load %arg3[%c0_3, %c0_4] : memref<1x512xf32, #tpu.memory_space<vmem>>, vector<1x512xf32>
    %5 = vector.broadcast %4 : vector<1x512xf32> to vector<16x512xf32>
    %6 = arith.addf %3, %5 : vector<16x512xf32>
    %cst_5 = arith.constant 0.000000e+00 : f32
    %7 = vector.broadcast %cst_5 : f32 to vector<16x512xf32>
    %8 = arith.maximumf %6, %7 : vector<16x512xf32>
    %9 = arith.truncf %8 : vector<16x512xf32> to vector<16x512xbf16>
    %c0_6 = arith.constant 0 : index
    %c0_7 = arith.constant 0 : index
    %10 = vector.load %arg4[%c0_6, %c0_7] : memref<512x128xbf16, #tpu.memory_space<vmem>>, vector<512x128xbf16>
    %cst_8 = arith.constant dense<0.000000e+00> : vector<16x128xf32>
    %11 = tpu.matmul %9, %10, %cst_8 {dimension_numbers = #tpu.dot_dimension_numbers<[1], [0], [0], [1], [0, 0, 1, 1], [], []>} : vector<16x512xbf16>, vector<512x128xbf16>, vector<16x128xf32> -> vector<16x128xf32>
    %c0_9 = arith.constant 0 : index
    %c0_10 = arith.constant 0 : index
    %12 = vector.load %arg5[%c0_9, %c0_10] : memref<1x128xf32, #tpu.memory_space<vmem>>, vector<1x128xf32>
    %13 = vector.broadcast %12 : vector<1x128xf32> to vector<16x128xf32>
    %14 = arith.addf %11, %13 : vector<16x128xf32>
    %cst_11 = arith.constant 0.000000e+00 : f32
    %15 = vector.broadcast %cst_11 : f32 to vector<16x128xf32>
    %16 = arith.maximumf %14, %15 : vector<16x128xf32>
    %17 = arith.truncf %16 : vector<16x128xf32> to vector<16x128xbf16>
    %c0_12 = arith.constant 0 : index
    %c0_13 = arith.constant 0 : index
    %18 = vector.load %arg6[%c0_12, %c0_13] : memref<128x128xbf16, #tpu.memory_space<vmem>>, vector<128x128xbf16>
    %cst_14 = arith.constant dense<0.000000e+00> : vector<16x128xf32>
    %19 = tpu.matmul %17, %18, %cst_14 {dimension_numbers = #tpu.dot_dimension_numbers<[1], [0], [0], [1], [0, 0, 1, 1], [], []>} : vector<16x128xbf16>, vector<128x128xbf16>, vector<16x128xf32> -> vector<16x128xf32>
    %c0_15 = arith.constant 0 : index
    %c0_16 = arith.constant 0 : index
    %20 = vector.load %arg7[%c0_15, %c0_16] : memref<1x128xf32, #tpu.memory_space<vmem>>, vector<1x128xf32>
    %21 = vector.broadcast %20 : vector<1x128xf32> to vector<16x128xf32>
    %22 = arith.addf %19, %21 : vector<16x128xf32>
    %c0_17 = arith.constant 0 : index
    %c0_18 = arith.constant 0 : index
    %23 = vector.load %arg8[%c0_17, %c0_18] : memref<16x128xf32, #tpu.memory_space<vmem>>, vector<16x128xf32>
    tpu.vector_store %arg8[%c0_17, %c0_18], %22 {strides = array<i32>} : memref<16x128xf32, #tpu.memory_space<vmem>>, vector<16x128xf32>,
    return
  }
  func.func @transform_0(%arg0: i32) -> (i32, i32) {
    %c0_i32 = arith.constant 0 : i32
    %c0_i32_0 = arith.constant 0 : i32
    return %arg0, %c0_i32 : i32, i32
  }
  func.func @transform_1(%arg0: i32) -> (i32, i32) {
    %c0_i32 = arith.constant 0 : i32
    %c0_i32_0 = arith.constant 0 : i32
    %c0_i32_1 = arith.constant 0 : i32
    return %c0_i32, %c0_i32_0 : i32, i32
  }
  func.func @transform_2(%arg0: i32) -> (i32, i32) {
    %c0_i32 = arith.constant 0 : i32
    %c0_i32_0 = arith.constant 0 : i32
    %c0_i32_1 = arith.constant 0 : i32
    return %c0_i32, %c0_i32_0 : i32, i32
  }
  func.func @transform_3(%arg0: i32) -> (i32, i32) {
    %c0_i32 = arith.constant 0 : i32
    %c0_i32_0 = arith.constant 0 : i32
    %c0_i32_1 = arith.constant 0 : i32
    return %c0_i32, %c0_i32_0 : i32, i32
  }
  func.func @transform_4(%arg0: i32) -> (i32, i32) {
    %c0_i32 = arith.constant 0 : i32
    %c0_i32_0 = arith.constant 0 : i32
    %c0_i32_1 = arith.constant 0 : i32
    return %c0_i32, %c0_i32_0 : i32, i32
  }
  func.func @transform_5(%arg0: i32) -> (i32, i32) {
    %c0_i32 = arith.constant 0 : i32
    %c0_i32_0 = arith.constant 0 : i32
    %c0_i32_1 = arith.constant 0 : i32
    return %c0_i32, %c0_i32_0 : i32, i32
  }
  func.func @transform_6(%arg0: i32) -> (i32, i32) {
    %c0_i32 = arith.constant 0 : i32
    %c0_i32_0 = arith.constant 0 : i32
    %c0_i32_1 = arith.constant 0 : i32
    return %c0_i32, %c0_i32_0 : i32, i32
  }
  func.func @transform_7(%arg0: i32) -> (i32, i32) {
    %c0_i32 = arith.constant 0 : i32
    %c0_i32_0 = arith.constant 0 : i32
    return %arg0, %c0_i32 : i32, i32
  }
}

</mosaic_0001>

<bundles_post_ra>
// kernel: tpu_custom_call.1
= control target key start
LH: loop header
LB: loop body
LE: loop exit
PB: predicated region body
PF: predicated region fallthrough
CT: control target
= control target key end

     0   :  { %12 = vsyncpa [#allocation3], 0  ;;  %s3625_s0 = inlined_call_operand.hbm [shape: f32[16,784], index: 0, kind: input, shape index: {}]   ;;  %s3626_s1 = inlined_call_operand.hbm [shape: bf16[784,512], index: 1, kind: input, shape index: {}]   ;;  %s3627_s2 = inlined_call_operand.hbm [shape: f32[1,512], index: 2, kind: input, shape index: {}]   ;;  %s3628_s3 = inlined_call_operand.hbm [shape: bf16[512,128], index: 3, kind: input, shape index: {}]   ;;  %s3629_s4 = inlined_call_operand.vmem [shape: f32[1,128], index: 4, kind: input, shape index: {}]   ;;  %s3630_s5 = inlined_call_operand.hbm [shape: bf16[128,128], index: 5, kind: input, shape index: {}]   ;;  %s3631_s6 = inlined_call_operand.vmem [shape: f32[1,128], index: 6, kind: input, shape index: {}]   ;;  %s3632_s7 = inlined_call_operand.hbm [shape: f32[16,128], index: 7, kind: output, shape index: {}]  }
   0x1   :  { %13 = vsyncpa [#allocation6], 0 }
   0x2   :  { %14 = vsyncpa [#allocation9], 0  ;;  %s33_s26 = sshll.u32 %s3626_s1, 4  ;;  %s34_s26 = int_to_ptr.hbm [resolvable:$true] %s33_s26 }
   0x3   :  { %15 = vsyncpa [#allocation4], 0  ;;  %s3495_s27 = smov [#allocation5]   ;;  %s57_s8 = sshll.u32 %s3628_s3, 4  ;;  %s58_s8 = int_to_ptr.hbm [resolvable:$true] %s57_s8 }
   0x4   :  { %s35_s28 = sshll.u32 %s3495_s27, 4  ;;  %s3496_s9 = smov 256   ;;  %s36_s28 = int_to_ptr.vmem [resolvable:$true] %s35_s28 }
   0x5   :  { %s3497_s10 = smov 16   ;;  %s3498_s11 = smov [#allocation8]  }
   0x6   :  { %41 = dma.hbm_to_vmem [thread:$0]  %s34_s26, 25088, %s36_s28, [#allocation6], %s3496_s9, %s3496_s9, %s3497_s10  }
   0x7   :  { %s59_s12 = sshll.u32 %s3498_s11, 4  ;;  %s3499_s13 = smov 64   ;;  %s60_s12 = int_to_ptr.vmem [resolvable:$true] %s59_s12 }
   0x8   :  { %s3500_s14 = smov 4   ;;  %s20_s16 = sshll.u32 %s3625_s0, 4  ;;  %s21_s16 = int_to_ptr.hbm [resolvable:$true] %s20_s16 }
   0x9   :  { %65 = dma.hbm_to_vmem [thread:$0]  %s58_s8, 4096, %s60_s12, [#allocation9], %s3499_s13, %s3499_s13, %s3500_s14  }
   0xa   :  { %s3501_s17 = smov [#allocation2]   ;;  %s47_s20 = sshll.u32 %s3627_s2, 4  ;;  %s48_s20 = int_to_ptr.hbm [resolvable:$true] %s47_s20 }
   0xb   :  { %s22_s18 = sshll.u32 %s3501_s17, 4  ;;  %s3502_s21 = smov 896   ;;  %s23_s18 = int_to_ptr.vmem [resolvable:$true] %s22_s18 }
   0xc   :  { %s3503_s22 = smov 56   ;;  %s3504_s23 = smov [#allocation7]  }
   0xd   :  { %28 = dma.hbm_to_vmem [thread:$0]  %s21_s16, 1792, %s23_s18, [#allocation3], %s3502_s21, %s3502_s21, %s3503_s22  }
   0xe   :  { %s49_s24 = sshll.u32 %s3504_s23, 4  ;;  %s72_s27 = sshll.u32 %s3630_s5, 4  ;;  %s50_s24 = int_to_ptr.vmem [resolvable:$true] %s49_s24  ;;  %s73_s27 = int_to_ptr.hbm [resolvable:$true] %s72_s27 }
   0xf   :  { %52 = dma.hbm_to_vmem [thread:$0]  %s48_s20, 64, %s50_s24, [#allocation6]  }
  0x10   :  { %s3505_s0 = smov [#allocation10]  }
  0x11   :  { %s74_s28 = sshll.u32 %s3505_s0, 4  ;;  %s75_s28 = int_to_ptr.vmem [resolvable:$true] %s74_s28 }
  0x12   :  { %80 = dma.hbm_to_vmem [thread:$0]  %s73_s27, 1024, %s75_s28, [#allocation9], %s3499_s13, %s3499_s13, %s3500_s14  }
  0x13   :  { %3487 = dma.done.wait [#allocation3], 1792  }
  0x14   :  { %3488 = vsyncadd [#allocation3], 4294965504 }
  0x15   :  { %3489 = dma.done.wait [#allocation6], 25152  }
  0x16   :  { %3490 = vsyncadd [#allocation6], 4294942144 }
  0x17   :  { %3491 = dma.done.wait [#allocation9], 5120  }
  0x18   :  { %3492 = vsyncadd [#allocation9], 4294962176  ;;  %v2257_v0 = vld [vmem:[#allocation5 + $0xe0] sm:$0xf]  ;;  %v3121_v1 = vld [vmem:[#allocation5 + $0xec] sm:$0xf0] }
  0x19   :  { %v2385_v2 = vld [vmem:[#allocation5 + $0x1e0] sm:$0xf]  ;;  %v2258_v3 = vor.u32 %v3121_v1, %v2257_v0  ;;  %v3153_v4 = vld [vmem:[#allocation5 + $0x1ec] sm:$0xf0]  ;;  %vm1311_vm0 = vcmask 130048   ;;  %s2128_s11 = sshll.u32 %s3632_s7, 4  ;;  %s2129_s11 = int_to_ptr.hbm [resolvable:$true] %s2128_s11 }
  0x1a   :  { %v2513_v5 = vld [vmem:[#allocation5 + $0x2e0] sm:$0xf]  ;;  %v3185_v6 = vld [vmem:[#allocation5 + $0x2ec] sm:$0xf0]  ;;  %v2386_v7 = vor.u32 %v3153_v4, %v2385_v2  ;;  %s3507_s12 = smov 128   ;;  %s3508_s13 = smov 8  }
  0x1b   :  { %v2514_v8 = vor.u32 %v3185_v6, %v2513_v5  ;;  %v2641_v9 = vld [vmem:[#allocation5 + $0x3e0] sm:$0xf]  ;;  %v3217_v10 = vld [vmem:[#allocation5 + $0x3ec] sm:$0xf0]  ;;  %1315 = vmatpush.bf16.msra.mxu0 %v2258_v3 }
  0x1c   :  { %v2241_v11 = vld [vmem:[#allocation5 + $0xc0] sm:$0xf]  ;;  %v2642_v12 = vor.u32 %v3217_v10, %v2641_v9  ;;  %v3117_v13 = vld [vmem:[#allocation5 + $0xcc] sm:$0xf0]  ;;  %1329 = vmatpush.bf16.msra.mxu1 %v2386_v7 }
  0x1d   :  { %v2369_v14 = vld [vmem:[#allocation5 + $0x1c0] sm:$0xf]  ;;  %v3149_v15 = vld [vmem:[#allocation5 + $0x1cc] sm:$0xf0]  ;;  %1343 = vmatpush.bf16.msra.mxu2 %v2514_v8  ;;  %v2242_v16 = vor.u32 %v3117_v13, %v2241_v11 }
  0x1e   :  { %v2370_v17 = vor.u32 %v3149_v15, %v2369_v14  ;;  %v2497_v18 = vld [vmem:[#allocation5 + $0x2c0] sm:$0xf]  ;;  %v3181_v19 = vld [vmem:[#allocation5 + $0x2cc] sm:$0xf0]  ;;  %1357 = vmatpush.bf16.msra.mxu3 %v2642_v12 }
  0x1f   :  { %v2625_v20 = vld [vmem:[#allocation5 + $0x3c0] sm:$0xf]  ;;  %v2498_v21 = vor.u32 %v3181_v19, %v2497_v18  ;;  %v3213_v22 = vld [vmem:[#allocation5 + $0x3cc] sm:$0xf0]  ;;  %1316 = vmatpush.bf16.msra.mxu0 %v2242_v16 }
  0x20   :  { %v2225_v23 = vld [vmem:[#allocation5 + $0xa0] sm:$0xf]  ;;  %v3113_v24 = vld [vmem:[#allocation5 + $0xac] sm:$0xf0]  ;;  %v2626_v25 = vor.u32 %v3213_v22, %v2625_v20  ;;  %1330 = vmatpush.bf16.msra.mxu1 %v2370_v17 }
  0x21   :  { %v2353_v26 = vld [vmem:[#allocation5 + $0x1a0] sm:$0xf]  ;;  %v3145_v27 = vld [vmem:[#allocation5 + $0x1ac] sm:$0xf0]  ;;  %v2226_v29 = vor.u32 %v3113_v24, %v2225_v23  ;;  %1344 = vmatpush.bf16.msra.mxu2 %v2498_v21 }
  0x22   :  { %v2481_v28 = vld [vmem:[#allocation5 + $0x2a0] sm:$0xf]  ;;  %v3177_v30 = vld [vmem:[#allocation5 + $0x2ac] sm:$0xf0]  ;;  %v2354_v33 = vor.u32 %v3145_v27, %v2353_v26  ;;  %1358 = vmatpush.bf16.msra.mxu3 %v2626_v25 }
  0x23   :  { %v2609_v31 = vld [vmem:[#allocation5 + $0x3a0] sm:$0xf]  ;;  %v3209_v32 = vld [vmem:[#allocation5 + $0x3ac] sm:$0xf0]  ;;  %v2482_v34 = vor.u32 %v3177_v30, %v2481_v28  ;;  %1317 = vmatpush.bf16.msra.mxu0 %v2226_v29 }
  0x24   :  { %v2209_v35 = vld [vmem:[#allocation5 + $0x80] sm:$0xf]  ;;  %v3109_v36 = vld [vmem:[#allocation5 + $0x8c] sm:$0xf0]  ;;  %v2610_v38 = vor.u32 %v3209_v32, %v2609_v31  ;;  %1331 = vmatpush.bf16.msra.mxu1 %v2354_v33  ;;  %v3119_v32 = vld [vmem:[#allocation5 + $0xe4] sm:$0xf] }
  0x25   :  { %v2337_v37 = vld [vmem:[#allocation5 + $0x180] sm:$0xf]  ;;  %v3141_v39 = vld [vmem:[#allocation5 + $0x18c] sm:$0xf0]  ;;  %v2210_v44 = vor.u32 %v3109_v36, %v2209_v35  ;;  %1345 = vmatpush.bf16.msra.mxu2 %v2482_v34  ;;  %v2259_v33 = vld [vmem:[#allocation5 + $0xf0] sm:$0xf0] }
  0x26   :  { %v2465_v40 = vld [vmem:[#allocation5 + $0x280] sm:$0xf]  ;;  %v3173_v41 = vld [vmem:[#allocation5 + $0x28c] sm:$0xf0]  ;;  %v2338_v45 = vor.u32 %v3141_v39, %v2337_v37  ;;  %1359 = vmatpush.bf16.msra.mxu3 %v2610_v38  ;;  %v113_v36 = vld [vmem:[#allocation2 + $0x48] sm:$0xff] }
  0x27   :  { %v2593_v42 = vld [vmem:[#allocation5 + $0x380] sm:$0xf]  ;;  %v3205_v43 = vld [vmem:[#allocation5 + $0x38c] sm:$0xf0]  ;;  %v2466_v46 = vor.u32 %v3173_v41, %v2465_v40  ;;  %1318 = vmatpush.bf16.msra.mxu0 %v2210_v44  ;;  %v3151_v41 = vld [vmem:[#allocation5 + $0x1e4] sm:$0xf] }
  0x28   :  { %v2193_v47 = vld [vmem:[#allocation5 + $0x60] sm:$0xf]  ;;  %v3105_v48 = vld [vmem:[#allocation5 + $0x6c] sm:$0xf0]  ;;  %v2594_v50 = vor.u32 %v3205_v43, %v2593_v42  ;;  %1332 = vmatpush.bf16.msra.mxu1 %v2338_v45  ;;  %v111_v43 = vld [vmem:[#allocation2 + $0x38] sm:$0xff] }
  0x29   :  { %v2321_v49 = vld [vmem:[#allocation5 + $0x160] sm:$0xf]  ;;  %v3137_v51 = vld [vmem:[#allocation5 + $0x16c] sm:$0xf0]  ;;  %v2194_v56 = vor.u32 %v3105_v48, %v2193_v47  ;;  %1346 = vmatpush.bf16.msra.mxu2 %v2466_v46  ;;  %v2387_v46 = vld [vmem:[#allocation5 + $0x1f0] sm:$0xf0] }
  0x2a   :  { %v2449_v52 = vld [vmem:[#allocation5 + $0x260] sm:$0xf]  ;;  %v3169_v53 = vld [vmem:[#allocation5 + $0x26c] sm:$0xf0]  ;;  %v2322_v57 = vor.u32 %v3137_v51, %v2321_v49  ;;  %1360 = vmatpush.bf16.msra.mxu3 %v2594_v50  ;;  %v107_v47 = vld [vmem:[#allocation2 + $0x18] sm:$0xff]  ;;  %v2262_v50 = vor.u32 %v3119_v32, %v2259_v33 }
  0x2b   :  { %v2577_v54 = vld [vmem:[#allocation5 + $0x360] sm:$0xf]  ;;  %v3201_v55 = vld [vmem:[#allocation5 + $0x36c] sm:$0xf0]  ;;  %v2450_v58 = vor.u32 %v3169_v53, %v2449_v52  ;;  %1319 = vmatpush.bf16.msra.mxu0 %v2194_v56 }
  0x2c   :  { %v2177_v59 = vld [vmem:[#allocation5 + $0x40] sm:$0xf]  ;;  %v3101_v60 = vld [vmem:[#allocation5 + $0x4c] sm:$0xf0]  ;;  %v2578_v62 = vor.u32 %v3201_v55, %v2577_v54  ;;  %1333 = vmatpush.bf16.msra.mxu1 %v2322_v57  ;;  %v3115_v57 = vld [vmem:[#allocation5 + $0xc4] sm:$0xf] }
  0x2d   :  { %v2305_v61 = vld [vmem:[#allocation5 + $0x140] sm:$0xf]  ;;  %v3133_v63 = vld [vmem:[#allocation5 + $0x14c] sm:$0xf0]  ;;  %v2178_v4 = vor.u32 %v3101_v60, %v2177_v59  ;;  %1347 = vmatpush.bf16.msra.mxu2 %v2450_v58  ;;  %v2243_v58 = vld [vmem:[#allocation5 + $0xd0] sm:$0xf0] }
  0x2e   :  { %v2433_v0 = vld [vmem:[#allocation5 + $0x240] sm:$0xf]  ;;  %v3165_v1 = vld [vmem:[#allocation5 + $0x24c] sm:$0xf0]  ;;  %v2306_v6 = vor.u32 %v3133_v63, %v2305_v61  ;;  %1361 = vmatpush.bf16.msra.mxu3 %v2578_v62  ;;  %v105_v61 = vld [vmem:[#allocation2 + $0x8] sm:$0xff]  ;;  %v2390_v63 = vor.u32 %v3151_v41, %v2387_v46 }
  0x2f   :  { %v2561_v2 = vld [vmem:[#allocation5 + $0x340] sm:$0xf]  ;;  %v3197_v3 = vld [vmem:[#allocation5 + $0x34c] sm:$0xf0]  ;;  %v2434_v7 = vor.u32 %v3165_v1, %v2433_v0  ;;  %1320 = vmatpush.bf16.msra.mxu0 %v2178_v4  ;;  %v3147_v1 = vld [vmem:[#allocation5 + $0x1c4] sm:$0xf]  ;;  %v2246_v4 = vor.u32 %v3115_v57, %v2243_v58 }
  0x30   :  { %v2161_v5 = vld [vmem:[#allocation5 + $0x20] sm:$0xf]  ;;  %v3097_v8 = vld [vmem:[#allocation5 + $0x2c] sm:$0xf0]  ;;  %v2562_v11 = vor.u32 %v3197_v3, %v2561_v2  ;;  %1334 = vmatpush.bf16.msra.mxu1 %v2306_v6  ;;  %v2371_v2 = vld [vmem:[#allocation5 + $0x1d0] sm:$0xf0] }
  0x31   :  { %v2289_v9 = vld [vmem:[#allocation5 + $0x120] sm:$0xf]  ;;  %v3129_v10 = vld [vmem:[#allocation5 + $0x12c] sm:$0xf0]  ;;  %v2162_v18 = vor.u32 %v3097_v8, %v2161_v5  ;;  %1348 = vmatpush.bf16.msra.mxu2 %v2434_v7  ;;  %v2323_v41 = vld [vmem:[#allocation5 + $0x170] sm:$0xf0] }
  0x32   :  { %v2417_v12 = vld [vmem:[#allocation5 + $0x220] sm:$0xf]  ;;  %v3161_v13 = vld [vmem:[#allocation5 + $0x22c] sm:$0xf0]  ;;  %v2290_v23 = vor.u32 %v3129_v10, %v2289_v9  ;;  %1362 = vmatpush.bf16.msra.mxu3 %v2562_v11  ;;  %v3111_v10 = vld [vmem:[#allocation5 + $0xa4] sm:$0xf] }
  0x33   :  { %v2545_v14 = vld [vmem:[#allocation5 + $0x320] sm:$0xf]  ;;  %v3193_v15 = vld [vmem:[#allocation5 + $0x32c] sm:$0xf0]  ;;  %v2418_v24 = vor.u32 %v3161_v13, %v2417_v12  ;;  %1321 = vmatpush.bf16.msra.mxu0 %v2162_v18  ;;  %v2227_v11 = vld [vmem:[#allocation5 + $0xb0] sm:$0xf0]  ;;  %v2374_v12 = vor.u32 %v3147_v1, %v2371_v2 }
  0x34   :  { %v2145_v16 = vld [vmem:[#allocation5] sm:$0xf]  ;;  %v3093_v17 = vld [vmem:[#allocation5 + $0xc] sm:$0xf0]  ;;  %v2546_v28 = vor.u32 %v3193_v15, %v2545_v14  ;;  %1335 = vmatpush.bf16.msra.mxu1 %v2290_v23  ;;  %v3143_v14 = vld [vmem:[#allocation5 + $0x1a4] sm:$0xf] }
  0x35   :  { %v2273_v19 = vld [vmem:[#allocation5 + $0x100] sm:$0xf]  ;;  %v3125_v20 = vld [vmem:[#allocation5 + $0x10c] sm:$0xf0]  ;;  %v2146_v35 = vor.u32 %v3093_v17, %v2145_v16  ;;  %1349 = vmatpush.bf16.msra.mxu2 %v2418_v24  ;;  %v2355_v15 = vld [vmem:[#allocation5 + $0x1b0] sm:$0xf0]  ;;  %v2230_v17 = vor.u32 %v3111_v10, %v2227_v11 }
  0x36   :  { %v2401_v21 = vld [vmem:[#allocation5 + $0x200] sm:$0xf]  ;;  %v3157_v22 = vld [vmem:[#allocation5 + $0x20c] sm:$0xf0]  ;;  %v2274_v39 = vor.u32 %v3125_v20, %v2273_v19  ;;  %1363 = vmatpush.bf16.msra.mxu3 %v2546_v28  ;;  %v2211_v23 = vld [vmem:[#allocation5 + $0x90] sm:$0xf0]  ;;  %v2358_v24 = vor.u32 %v3143_v14, %v2355_v15 }
  0x37   :  { %v2529_v25 = vld [vmem:[#allocation5 + $0x300] sm:$0xf]  ;;  %v3189_v26 = vld [vmem:[#allocation5 + $0x30c] sm:$0xf0]  ;;  %v2402_v40 = vor.u32 %v3157_v22, %v2401_v21  ;;  %1322 = vmatpush.bf16.msra.mxu0 %v2146_v35  ;;  %v3107_v22 = vld [vmem:[#allocation5 + $0x84] sm:$0xf] }
  0x38   :  { %v2769_v27 = vld [vmem:[#allocation5 + $0x4e0] sm:$0xf]  ;;  %v3249_v29 = vld [vmem:[#allocation5 + $0x4ec] sm:$0xf0]  ;;  %v2530_v44 = vor.u32 %v3189_v26, %v2529_v25  ;;  %1336 = vmatpush.bf16.msra.mxu1 %v2274_v39  ;;  %v3139_v26 = vld [vmem:[#allocation5 + $0x184] sm:$0xf] }
  0x39   :  { %v2897_v30 = vld [vmem:[#allocation5 + $0x5e0] sm:$0xf]  ;;  %v3281_v31 = vld [vmem:[#allocation5 + $0x5ec] sm:$0xf0]  ;;  %v2770_v45 = vor.u32 %v3249_v29, %v2769_v27  ;;  %1350 = vmatpush.bf16.msra.mxu2 %v2402_v40  ;;  %v2339_v27 = vld [vmem:[#allocation5 + $0x190] sm:$0xf0]  ;;  %v2214_v29 = vor.u32 %v3107_v22, %v2211_v23 }
  0x3a   :  { %v106_v34 = vld [vmem:[#allocation2 + $0x10] sm:$0xff]  ;;  %v3285_v38 = vld [vmem:[#allocation5 + $0x60c] sm:$0xf0]  ;;  %v2898_v49 = vor.u32 %v3281_v31, %v2897_v30  ;;  %1364 = vmatpush.bf16.msra.mxu3 %v2530_v44  ;;  %v2195_v35 = vld [vmem:[#allocation5 + $0x70] sm:$0xf0] }
  0x3b   :  { %v2913_v37 = vld [vmem:[#allocation5 + $0x600] sm:$0xf]  ;;  %v104_v42 = vld [vmem:[#allocation2] sm:$0xff]  ;;  %v3564_v54 = vpack.c.bf16 %v113_v36, %v106_v34  ;;  %1371 = vmatpush.bf16.msrb.mxu0 %v2770_v45  ;;  %v3103_v34 = vld [vmem:[#allocation5 + $0x64] sm:$0xf] }
  0x3c   :  { %v114_v48 = vld [vmem:[#allocation2 + $0x50] sm:$0xff]  ;;  %v3245_v52 = vld [vmem:[#allocation5 + $0x4cc] sm:$0xf0]  ;;  %v3566_v55 = vpack.c.bf16 %v111_v43, %v104_v42  ;;  %v2914_v59 = vor.u32 %v3285_v38, %v2913_v37  ;;  %1385 = vmatpush.bf16.msrb.mxu1 %v2898_v49  ;;  %v117_v37 = vld [vmem:[#allocation2 + $0x68] sm:$0xff]  ;;  %v2342_v38 = vor.u32 %v3139_v26, %v2339_v27  ;;  %v2198_v43 = vor.u32 %v3103_v34, %v2195_v35 }
  0x3d   :  { %v2753_v51 = vld [vmem:[#allocation5 + $0x4c0] sm:$0xf]  ;;  %v3277_v56 = vld [vmem:[#allocation5 + $0x5cc] sm:$0xf0]  ;;  %v3568_v60 = vpack.c.bf16 %v114_v48, %v107_v47  ;;  %1351 = vmatmul.bf16.vlgmr.msra.gmra.mxu2 %v3564_v54  ;;  %v3135_v40 = vld [vmem:[#allocation5 + $0x164] sm:$0xf] }
  0x3e   :  { %v2881_v53 = vld [vmem:[#allocation5 + $0x5c0] sm:$0xf]  ;;  %v112_v62 = vld [vmem:[#allocation2 + $0x40] sm:$0xff]  ;;  %v2754_v0 = vor.u32 %v3245_v52, %v2753_v51  ;;  %1413 = vmatpush.bf16.msrb.mxu3 %v2262_v50  ;;  %1323 = vmatmul.bf16.vlgmr.msra.gmra.mxu0 %v3566_v55  ;;  %v3099_v48 = vld [vmem:[#allocation5 + $0x44] sm:$0xf]  ;;  %v2326_v51 = vor.u32 %v3135_v40, %v2323_v41 }
  0x3f   :  { %v2882_v3 = vor.u32 %v3277_v56, %v2881_v53  ;;  %v2737_v5 = vld [vmem:[#allocation5 + $0x4a0] sm:$0xf]  ;;  %v3241_v6 = vld [vmem:[#allocation5 + $0x4ac] sm:$0xf0]  ;;  %v3572_v8 = vpack.c.bf16 %v112_v62, %v105_v61  ;;  %1406 = vmatpush.bf16.msrb.mxu2 %v2914_v59  ;;  %1365 = vmatmul.bf16.vlgmr.msra.gmra.mxu3 %v3568_v60  ;;  %v2179_v49 = vld [vmem:[#allocation5 + $0x50] sm:$0xf0] }
  0x40   :  { %v2865_v7 = vld [vmem:[#allocation5 + $0x5a0] sm:$0xf]  ;;  %v3273_v9 = vld [vmem:[#allocation5 + $0x5ac] sm:$0xf0]  ;;  %1372 = vmatpush.bf16.msrb.mxu0 %v2754_v0  ;;  %v2738_v13 = vor.u32 %v3241_v6, %v2737_v5  ;;  %v3131_v53 = vld [vmem:[#allocation5 + $0x144] sm:$0xf]  ;;  %v2182_v58 = vor.u32 %v3099_v48, %v2179_v49 }
  0x41   :  { %1386 = vmatpush.bf16.msrb.mxu1 %v2882_v3  ;;  %v2866_v16 = vor.u32 %v3273_v9, %v2865_v7  ;;  %v2721_v18 = vld [vmem:[#allocation5 + $0x480] sm:$0xf]  ;;  %v3237_v19 = vld [vmem:[#allocation5 + $0x48c] sm:$0xf0]  ;;  %v2307_v56 = vld [vmem:[#allocation5 + $0x150] sm:$0xf0] }
  0x42   :  { %1414 = vmatpush.bf16.msrb.mxu3 %v2246_v4  ;;  %v2849_v20 = vld [vmem:[#allocation5 + $0x580] sm:$0xf]  ;;  %1337 = vmatmul.bf16.vlgmr.msra.gmra.mxu1 %v3572_v8  ;;  %v3269_v21 = vld [vmem:[#allocation5 + $0x58c] sm:$0xf0]  ;;  %v2722_v25 = vor.u32 %v3237_v19, %v2721_v18  ;;  %v3095_v0 = vld [vmem:[#allocation5 + $0x24] sm:$0xf]  ;;  %v2310_v4 = vor.u32 %v3131_v53, %v2307_v56 }
  0x43   :  { %1427 = vmatpush.bf16.msra.mxu2 %v2390_v63  ;;  %v2850_v28 = vor.u32 %v3269_v21, %v2849_v20  ;;  %v2705_v30 = vld [vmem:[#allocation5 + $0x460] sm:$0xf]  ;;  %v3233_v31 = vld [vmem:[#allocation5 + $0x46c] sm:$0xf0]  ;;  %v2163_v1 = vld [vmem:[#allocation5 + $0x30] sm:$0xf0] }
  0x44   :  { %1373 = vmatpush.bf16.msrb.mxu0 %v2738_v13  ;;  %v2833_v32 = vld [vmem:[#allocation5 + $0x560] sm:$0xf]  ;;  %v3265_v33 = vld [vmem:[#allocation5 + $0x56c] sm:$0xf0]  ;;  %v2706_v39 = vor.u32 %v3233_v31, %v2705_v30  ;;  %v3127_v2 = vld [vmem:[#allocation5 + $0x124] sm:$0xf]  ;;  %v2166_v11 = vor.u32 %v3095_v0, %v2163_v1 }
  0x45   :  { %1387 = vmatpush.bf16.msrb.mxu1 %v2866_v16  ;;  %v110_v36 = vld [vmem:[#allocation2 + $0x30] sm:$0xff]  ;;  %v2834_v42 = vor.u32 %v3265_v33, %v2833_v32  ;;  %v3229_v45 = vld [vmem:[#allocation5 + $0x44c] sm:$0xf0]  ;;  %v2291_v3 = vld [vmem:[#allocation5 + $0x130] sm:$0xf0] }
  0x46   :  { %1415 = vmatpush.bf16.msrb.mxu3 %v2230_v17  ;;  %v2689_v44 = vld [vmem:[#allocation5 + $0x440] sm:$0xf]  ;;  %v3261_v47 = vld [vmem:[#allocation5 + $0x54c] sm:$0xf0]  ;;  %v3576_v50 = vpack.c.bf16 %v117_v37, %v110_v36  ;;  %v3091_v13 = vld [vmem:[#allocation5 + $0x4] sm:$0xf]  ;;  %v2294_v21 = vor.u32 %v3127_v2, %v2291_v3 }
  0x47   :  { %1428 = vmatpush.bf16.msra.mxu2 %v2374_v12  ;;  %v2817_v46 = vld [vmem:[#allocation5 + $0x540] sm:$0xf]  ;;  %v2690_v52 = vor.u32 %v3229_v45, %v2689_v44  ;;  %v3225_v61 = vld [vmem:[#allocation5 + $0x42c] sm:$0xf0]  ;;  %v2147_v14 = vld [vmem:[#allocation5 + $0x10] sm:$0xf0] }
  0x48   :  { %1374 = vmatpush.bf16.msrb.mxu0 %v2722_v25  ;;  %v2818_v57 = vor.u32 %v3261_v47, %v2817_v46  ;;  %v2673_v59 = vld [vmem:[#allocation5 + $0x420] sm:$0xf]  ;;  %v3257_v63 = vld [vmem:[#allocation5 + $0x52c] sm:$0xf0]  ;;  %v3183_v15 = vld [vmem:[#allocation5 + $0x2e4] sm:$0xf]  ;;  %v2150_v27 = vor.u32 %v3091_v13, %v2147_v14 }
  0x49   :  { %1388 = vmatpush.bf16.msrb.mxu1 %v2850_v28  ;;  %v2801_v62 = vld [vmem:[#allocation5 + $0x520] sm:$0xf]  ;;  %v2674_v5 = vor.u32 %v3225_v61, %v2673_v59  ;;  %v3221_v7 = vld [vmem:[#allocation5 + $0x40c] sm:$0xf0]  ;;  %v2515_v16 = vld [vmem:[#allocation5 + $0x2f0] sm:$0xf0] }
  0x4a   :  { %1416 = vmatpush.bf16.msrb.mxu3 %v2214_v29  ;;  %v2657_v6 = vld [vmem:[#allocation5 + $0x400] sm:$0xf]  ;;  %v2802_v10 = vor.u32 %v3257_v63, %v2801_v62  ;;  %v3253_v12 = vld [vmem:[#allocation5 + $0x50c] sm:$0xf0]  ;;  %v3215_v17 = vld [vmem:[#allocation5 + $0x3e4] sm:$0xf]  ;;  %v2518_v31 = vor.u32 %v3183_v15, %v2515_v16 }
  0x4b   :  { %1429 = vmatpush.bf16.msra.mxu2 %v2358_v24  ;;  %v2785_v9 = vld [vmem:[#allocation5 + $0x500] sm:$0xf]  ;;  %v2643_v18 = vld [vmem:[#allocation5 + $0x3f0] sm:$0xf0]  ;;  %v3247_v19 = vld [vmem:[#allocation5 + $0x4e4] sm:$0xf]  ;;  %v2658_v22 = vor.u32 %v3221_v7, %v2657_v6 }
  0x4c   :  { %1375 = vmatpush.bf16.msrb.mxu0 %v2706_v39  ;;  %v2771_v20 = vld [vmem:[#allocation5 + $0x4f0] sm:$0xf0]  ;;  %v115_v24 = vld [vmem:[#allocation2 + $0x58] sm:$0xff]  ;;  %v3123_v25 = vld [vmem:[#allocation5 + $0x104] sm:$0xf]  ;;  %v2786_v26 = vor.u32 %v3253_v12, %v2785_v9  ;;  %v2646_v32 = vor.u32 %v3215_v17, %v2643_v18 }
  0x4d   :  { %1389 = vmatpush.bf16.msrb.mxu1 %v2834_v42  ;;  %2927 = vmatmul.msk.bf16.vlgmr.msrb.gmra.mxu2 %vm1311_vm0, %v3576_v50  ;;  %v108_v23 = vld [vmem:[#allocation2 + $0x20] sm:$0xff]  ;;  %v109_v29 = vld [vmem:[#allocation2 + $0x28] sm:$0xff]  ;;  %v3279_v33 = vld [vmem:[#allocation5 + $0x5e4] sm:$0xf]  ;;  %v2774_v36 = vor.u32 %v3247_v19, %v2771_v20 }
  0x4e   :  { %1417 = vmatpush.bf16.msrb.mxu3 %v2198_v43  ;;  %v2275_v28 = vld [vmem:[#allocation5 + $0x110] sm:$0xf0]  ;;  %v3179_v35 = vld [vmem:[#allocation5 + $0x2c4] sm:$0xf]  ;;  %v3580_v37 = vpack.c.bf16 %v115_v24, %v108_v23 }
  0x4f   :  { %1430 = vmatpush.bf16.msra.mxu2 %v2342_v38  ;;  %v116_v30 = vld [vmem:[#allocation2 + $0x60] sm:$0xff]  ;;  %v3211_v39 = vld [vmem:[#allocation5 + $0x3c4] sm:$0xf]  ;;  %v2278_v41 = vor.u32 %v3123_v25, %v2275_v28 }
  0x50   :  { %1376 = vmatpush.bf16.msrb.mxu0 %v2690_v52  ;;  %v2899_v34 = vld [vmem:[#allocation5 + $0x5f0] sm:$0xf0]  ;;  %v3582_v42 = vpack.c.bf16 %v116_v30, %v109_v29  ;;  %v3243_v43 = vld [vmem:[#allocation5 + $0x4c4] sm:$0xf] }
  0x51   :  { %1390 = vmatpush.bf16.msrb.mxu1 %v2818_v57  ;;  %v2499_v38 = vld [vmem:[#allocation5 + $0x2d0] sm:$0xf0]  ;;  %v2902_v45 = vor.u32 %v3279_v33, %v2899_v34  ;;  %v3275_v48 = vld [vmem:[#allocation5 + $0x5c4] sm:$0xf] }
  0x52   :  { %1418 = vmatpush.bf16.msrb.mxu3 %v2182_v58  ;;  %v2627_v40 = vld [vmem:[#allocation5 + $0x3d0] sm:$0xf0]  ;;  %v2502_v46 = vor.u32 %v3179_v35, %v2499_v38  ;;  %v3207_v56 = vld [vmem:[#allocation5 + $0x3a4] sm:$0xf] }
  0x53   :  { %1431 = vmatpush.bf16.msra.mxu2 %v2326_v51  ;;  %v2755_v44 = vld [vmem:[#allocation5 + $0x4d0] sm:$0xf0]  ;;  %v2630_v47 = vor.u32 %v3211_v39, %v2627_v40  ;;  %v3175_v51 = vld [vmem:[#allocation5 + $0x2a4] sm:$0xf] }
  0x54   :  { %1377 = vmatpush.bf16.msrb.mxu0 %v2674_v5  ;;  %v2883_v49 = vld [vmem:[#allocation5 + $0x5d0] sm:$0xf0]  ;;  %v2758_v52 = vor.u32 %v3243_v43, %v2755_v44  ;;  %v3239_v58 = vld [vmem:[#allocation5 + $0x4a4] sm:$0xf] }
  0x55   :  { %1391 = vmatpush.bf16.msrb.mxu1 %v2802_v10  ;;  %v2483_v53 = vld [vmem:[#allocation5 + $0x2b0] sm:$0xf0]  ;;  %v2886_v61 = vor.u32 %v3275_v48, %v2883_v49  ;;  %v3271_v0 = vld [vmem:[#allocation5 + $0x5a4] sm:$0xf] }
  0x56   :  { %1419 = vmatpush.bf16.msrb.mxu3 %v2166_v11  ;;  %v2611_v57 = vld [vmem:[#allocation5 + $0x3b0] sm:$0xf0]  ;;  %v2486_v62 = vor.u32 %v3175_v51, %v2483_v53  ;;  %v3171_v2 = vld [vmem:[#allocation5 + $0x284] sm:$0xf] }
  0x57   :  { %1432 = vmatpush.bf16.msra.mxu2 %v2310_v4  ;;  %v2739_v59 = vld [vmem:[#allocation5 + $0x4b0] sm:$0xf0]  ;;  %v2614_v63 = vor.u32 %v3207_v56, %v2611_v57  ;;  %v3203_v5 = vld [vmem:[#allocation5 + $0x384] sm:$0xf] }
  0x58   :  { %1378 = vmatpush.bf16.msrb.mxu0 %v2658_v22  ;;  %v2867_v1 = vld [vmem:[#allocation5 + $0x5b0] sm:$0xf0]  ;;  %v2742_v3 = vor.u32 %v3239_v58, %v2739_v59  ;;  %v3235_v7 = vld [vmem:[#allocation5 + $0x484] sm:$0xf] }
  0x59   :  { %1392 = vmatpush.bf16.msrb.mxu1 %v2786_v26  ;;  %v2467_v4 = vld [vmem:[#allocation5 + $0x290] sm:$0xf0]  ;;  %v2870_v10 = vor.u32 %v3271_v0, %v2867_v1  ;;  %v3267_v13 = vld [vmem:[#allocation5 + $0x584] sm:$0xf]  ;;  %v2265_v0 = vld [vmem:[#allocation5 + $0xe8] sm:$0xf] }
  0x5a   :  { %1420 = vmatpush.bf16.msrb.mxu3 %v2150_v27  ;;  %v2595_v6 = vld [vmem:[#allocation5 + $0x390] sm:$0xf0]  ;;  %v2470_v11 = vor.u32 %v3171_v2, %v2467_v4  ;;  %v3167_v15 = vld [vmem:[#allocation5 + $0x264] sm:$0xf]  ;;  %v3122_v1 = vld [vmem:[#allocation5 + $0xf4] sm:$0xf0] }
  0x5b   :  { %1433 = vmatpush.bf16.msra.mxu2 %v2294_v21  ;;  %1379 = vmatmul.bf16.vlgmr.msrb.gmra.mxu0 %v3580_v37  ;;  %v2723_v9 = vld [vmem:[#allocation5 + $0x490] sm:$0xf0]  ;;  %v2598_v12 = vor.u32 %v3203_v5, %v2595_v6  ;;  %v3199_v18 = vld [vmem:[#allocation5 + $0x364] sm:$0xf]  ;;  %v2393_v2 = vld [vmem:[#allocation5 + $0x1e8] sm:$0xf] }
  0x5c   :  { %1441 = vmatpush.bf16.msra.mxu0 %v2518_v31  ;;  %1393 = vmatmul.bf16.vlgmr.msrb.gmra.mxu1 %v3582_v42  ;;  %v2851_v14 = vld [vmem:[#allocation5 + $0x590] sm:$0xf0]  ;;  %v2726_v16 = vor.u32 %v3235_v7, %v2723_v9  ;;  %v3231_v20 = vld [vmem:[#allocation5 + $0x464] sm:$0xf]  ;;  %v3154_v4 = vld [vmem:[#allocation5 + $0x1f4] sm:$0xf0] }
  0x5d   :  { %1455 = vmatpush.bf16.msra.mxu1 %v2646_v32  ;;  %1421 = vmatmul.bf16.vlgmr.msrb.gmra.mxu3 %v3566_v55  ;;  %v2451_v17 = vld [vmem:[#allocation5 + $0x270] sm:$0xf0]  ;;  %v2854_v22 = vor.u32 %v3267_v13, %v2851_v14  ;;  %v3263_v25 = vld [vmem:[#allocation5 + $0x564] sm:$0xf]  ;;  %v2266_v13 = vor.u32 %v3122_v1, %v2265_v0  ;;  %v2521_v14 = vld [vmem:[#allocation5 + $0x2e8] sm:$0xf] }
  0x5e   :  { %1469 = vmatpush.bf16.msra.mxu3 %v2774_v36  ;;  %v2579_v19 = vld [vmem:[#allocation5 + $0x370] sm:$0xf0]  ;;  %v2454_v23 = vor.u32 %v3167_v15, %v2451_v17  ;;  %v3163_v27 = vld [vmem:[#allocation5 + $0x244] sm:$0xf]  ;;  %v3186_v15 = vld [vmem:[#allocation5 + $0x2f4] sm:$0xf0]  ;;  %v2394_v17 = vor.u32 %v3154_v4, %v2393_v2 }
  0x5f   :  { %1434 = vmatpush.bf16.msra.mxu2 %v2278_v41  ;;  %v2707_v21 = vld [vmem:[#allocation5 + $0x470] sm:$0xf0]  ;;  %v2582_v24 = vor.u32 %v3199_v18, %v2579_v19  ;;  %v3195_v30 = vld [vmem:[#allocation5 + $0x344] sm:$0xf]  ;;  %v3218_v19 = vld [vmem:[#allocation5 + $0x3f4] sm:$0xf0] }
  0x60   :  { %1442 = vmatpush.bf16.msra.mxu0 %v2502_v46  ;;  %v2835_v26 = vld [vmem:[#allocation5 + $0x570] sm:$0xf0]  ;;  %v2710_v28 = vor.u32 %v3231_v20, %v2707_v21  ;;  %v3227_v32 = vld [vmem:[#allocation5 + $0x444] sm:$0xf]  ;;  %v2249_v20 = vld [vmem:[#allocation5 + $0xc8] sm:$0xf] }
  0x61   :  { %1456 = vmatpush.bf16.msra.mxu1 %v2630_v47  ;;  %v2435_v29 = vld [vmem:[#allocation5 + $0x250] sm:$0xf0]  ;;  %v2838_v34 = vor.u32 %v3263_v25, %v2835_v26  ;;  %v3259_v38 = vld [vmem:[#allocation5 + $0x544] sm:$0xf]  ;;  %v3118_v21 = vld [vmem:[#allocation5 + $0xd4] sm:$0xf0]  ;;  %v2522_v25 = vor.u32 %v3186_v15, %v2521_v14 }
  0x62   :  { %1470 = vmatpush.bf16.msra.mxu3 %v2758_v52  ;;  %1435 = vmatmul.bf16.vlgmr.msra.gmra.mxu2 %v3572_v8  ;;  %v2563_v31 = vld [vmem:[#allocation5 + $0x350] sm:$0xf0]  ;;  %v2438_v35 = vor.u32 %v3163_v27, %v2435_v29  ;;  %v3159_v40 = vld [vmem:[#allocation5 + $0x224] sm:$0xf]  ;;  %v2250_v27 = vor.u32 %v3118_v21, %v2249_v20  ;;  %v3182_v29 = vld [vmem:[#allocation5 + $0x2d4] sm:$0xf0] }
  0x63   :  { %1483 = vmatpush.bf16.msrb.mxu2 %v2902_v45  ;;  %v2691_v33 = vld [vmem:[#allocation5 + $0x450] sm:$0xf0]  ;;  %v2566_v36 = vor.u32 %v3195_v30, %v2563_v31  ;;  %v3191_v44 = vld [vmem:[#allocation5 + $0x324] sm:$0xf]  ;;  %v2633_v30 = vld [vmem:[#allocation5 + $0x3c8] sm:$0xf] }
  0x64   :  { %1443 = vmatpush.bf16.msra.mxu0 %v2486_v62  ;;  %v2819_v39 = vld [vmem:[#allocation5 + $0x550] sm:$0xf0]  ;;  %v2694_v41 = vor.u32 %v3227_v32, %v2691_v33  ;;  %v3223_v46 = vld [vmem:[#allocation5 + $0x424] sm:$0xf]  ;;  %v3214_v32 = vld [vmem:[#allocation5 + $0x3d4] sm:$0xf0] }
  0x65   :  { %1457 = vmatpush.bf16.msra.mxu1 %v2614_v63  ;;  %v2419_v43 = vld [vmem:[#allocation5 + $0x230] sm:$0xf0]  ;;  %v2822_v48 = vor.u32 %v3259_v38, %v2819_v39  ;;  %v3255_v49 = vld [vmem:[#allocation5 + $0x524] sm:$0xf]  ;;  %v2233_v33 = vld [vmem:[#allocation5 + $0xa8] sm:$0xf]  ;;  %v2634_v39 = vor.u32 %v3214_v32, %v2633_v30 }
  0x66   :  { %1471 = vmatpush.bf16.msra.mxu3 %v2742_v3  ;;  %v2547_v45 = vld [vmem:[#allocation5 + $0x330] sm:$0xf0]  ;;  %v2422_v52 = vor.u32 %v3159_v40, %v2419_v43  ;;  %v3155_v56 = vld [vmem:[#allocation5 + $0x204] sm:$0xf]  ;;  %v3178_v43 = vld [vmem:[#allocation5 + $0x2b4] sm:$0xf0] }
  0x67   :  { %1484 = vmatpush.bf16.msrb.mxu2 %v2886_v61  ;;  %v2675_v47 = vld [vmem:[#allocation5 + $0x430] sm:$0xf0]  ;;  %v2550_v53 = vor.u32 %v3191_v44, %v2547_v45  ;;  %v3187_v58 = vld [vmem:[#allocation5 + $0x304] sm:$0xf]  ;;  %v2617_v44 = vld [vmem:[#allocation5 + $0x3a8] sm:$0xf] }
  0x68   :  { %1444 = vmatpush.bf16.msra.mxu0 %v2470_v11  ;;  %v2803_v51 = vld [vmem:[#allocation5 + $0x530] sm:$0xf0]  ;;  %v2678_v59 = vor.u32 %v3223_v46, %v2675_v47  ;;  %v3219_v62 = vld [vmem:[#allocation5 + $0x404] sm:$0xf]  ;;  %v3210_v46 = vld [vmem:[#allocation5 + $0x3b4] sm:$0xf0] }
  0x69   :  { %1458 = vmatpush.bf16.msra.mxu1 %v2598_v12  ;;  %v2403_v57 = vld [vmem:[#allocation5 + $0x210] sm:$0xf0]  ;;  %v2806_v3 = vor.u32 %v3255_v49, %v2803_v51  ;;  %v3283_v5 = vld [vmem:[#allocation5 + $0x604] sm:$0xf]  ;;  %v2217_v47 = vld [vmem:[#allocation5 + $0x88] sm:$0xf] }
  0x6a   :  { %1472 = vmatpush.bf16.msra.mxu3 %v2726_v16  ;;  %v2531_v61 = vld [vmem:[#allocation5 + $0x310] sm:$0xf0]  ;;  %v2406_v7 = vor.u32 %v3155_v56, %v2403_v57  ;;  %v2649_v16 = vld [vmem:[#allocation5 + $0x3e8] sm:$0xf]  ;;  %v3142_v51 = vld [vmem:[#allocation5 + $0x194] sm:$0xf0]  ;;  %v2618_v57 = vor.u32 %v3210_v46, %v2617_v44 }
  0x6b   :  { %1485 = vmatpush.bf16.msrb.mxu2 %v2870_v10  ;;  %v2659_v63 = vld [vmem:[#allocation5 + $0x410] sm:$0xf0]  ;;  %v2534_v9 = vor.u32 %v3187_v58, %v2531_v61  ;;  %v3251_v10 = vld [vmem:[#allocation5 + $0x504] sm:$0xf]  ;;  %v2650_v26 = vor.u32 %v3218_v19, %v2649_v16  ;;  %v2345_v49 = vld [vmem:[#allocation5 + $0x188] sm:$0xf] }
  0x6c   :  { %1445 = vmatpush.bf16.msra.mxu0 %v2454_v23  ;;  %v2915_v6 = vld [vmem:[#allocation5 + $0x610] sm:$0xf0]  ;;  %v2662_v12 = vor.u32 %v3219_v62, %v2659_v63  ;;  %v2377_v23 = vld [vmem:[#allocation5 + $0x1c8] sm:$0xf]  ;;  %v3174_v56 = vld [vmem:[#allocation5 + $0x294] sm:$0xf0]  ;;  %v2346_v62 = vor.u32 %v3142_v51, %v2345_v49 }
  0x6d   :  { %1459 = vmatpush.bf16.msra.mxu1 %v2582_v24  ;;  %v2787_v11 = vld [vmem:[#allocation5 + $0x510] sm:$0xf0]  ;;  %v2918_v18 = vor.u32 %v3283_v5, %v2915_v6  ;;  %v3150_v24 = vld [vmem:[#allocation5 + $0x1d4] sm:$0xf0]  ;;  %v2201_v63 = vld [vmem:[#allocation5 + $0x68] sm:$0xf] }
  0x6e   :  { %1473 = vmatpush.bf16.msra.mxu3 %v2710_v28  ;;  %v2505_v28 = vld [vmem:[#allocation5 + $0x2c8] sm:$0xf]  ;;  %v2378_v31 = vor.u32 %v3150_v24, %v2377_v23  ;;  %v3206_v61 = vld [vmem:[#allocation5 + $0x394] sm:$0xf0] }
  0x6f   :  { %1486 = vmatpush.bf16.msrb.mxu2 %v2854_v22  ;;  %v2790_v22 = vor.u32 %v3251_v10, %v2787_v11  ;;  %v2506_v38 = vor.u32 %v3182_v29, %v2505_v28  ;;  %v3106_v0 = vld [vmem:[#allocation5 + $0x74] sm:$0xf0]  ;;  %v2329_v1 = vld [vmem:[#allocation5 + $0x168] sm:$0xf] }
  0x70   :  { %1446 = vmatpush.bf16.msra.mxu0 %v2438_v35  ;;  %v2361_v35 = vld [vmem:[#allocation5 + $0x1a8] sm:$0xf]  ;;  %v3138_v2 = vld [vmem:[#allocation5 + $0x174] sm:$0xf0]  ;;  %v2202_v5 = vor.u32 %v3106_v0, %v2201_v63 }
  0x71   :  { %1460 = vmatpush.bf16.msra.mxu1 %v2566_v36  ;;  %v3146_v36 = vld [vmem:[#allocation5 + $0x1b4] sm:$0xf0]  ;;  %v2457_v6 = vld [vmem:[#allocation5 + $0x268] sm:$0xf]  ;;  %v2330_v10 = vor.u32 %v3138_v2, %v2329_v1 }
  0x72   :  { %1474 = vmatpush.bf16.msra.mxu3 %v2694_v41  ;;  %v2489_v41 = vld [vmem:[#allocation5 + $0x2a8] sm:$0xf]  ;;  %v2362_v45 = vor.u32 %v3146_v36, %v2361_v35  ;;  %v3202_v11 = vld [vmem:[#allocation5 + $0x374] sm:$0xf0] }
  0x73   :  { %1487 = vmatpush.bf16.msrb.mxu2 %v2838_v34  ;;  %v3114_v34 = vld [vmem:[#allocation5 + $0xb4] sm:$0xf0]  ;;  %v2313_v14 = vld [vmem:[#allocation5 + $0x148] sm:$0xf] }
  0x74   :  { %1447 = vmatpush.bf16.msra.mxu0 %v2422_v52  ;;  %v2234_v40 = vor.u32 %v3114_v34, %v2233_v33  ;;  %v2490_v52 = vor.u32 %v3178_v43, %v2489_v41  ;;  %v3134_v15 = vld [vmem:[#allocation5 + $0x154] sm:$0xf0]  ;;  %v2441_v19 = vld [vmem:[#allocation5 + $0x248] sm:$0xf] }
  0x75   :  { %1461 = vmatpush.bf16.msra.mxu1 %v2550_v53  ;;  %v2473_v53 = vld [vmem:[#allocation5 + $0x288] sm:$0xf]  ;;  %v3166_v20 = vld [vmem:[#allocation5 + $0x254] sm:$0xf0] }
  0x76   :  { %1475 = vmatpush.bf16.msra.mxu3 %v2678_v59  ;;  %v2601_v59 = vld [vmem:[#allocation5 + $0x388] sm:$0xf]  ;;  %v3198_v23 = vld [vmem:[#allocation5 + $0x354] sm:$0xf0]  ;;  %v2442_v28 = vor.u32 %v3166_v20, %v2441_v19 }
  0x77   :  { %1488 = vmatpush.bf16.msrb.mxu2 %v2822_v48  ;;  %v3110_v48 = vld [vmem:[#allocation5 + $0x94] sm:$0xf0]  ;;  %v2602_v4 = vor.u32 %v3206_v61, %v2601_v59  ;;  %v2569_v21 = vld [vmem:[#allocation5 + $0x348] sm:$0xf]  ;;  %v2267_v59 = vld [vmem:[#allocation5 + $0xf8] sm:$0xf0] }
  0x78   :  { %1448 = vmatpush.bf16.msra.mxu0 %v2406_v7  ;;  %v2218_v58 = vor.u32 %v3110_v48, %v2217_v47  ;;  %v3170_v7 = vld [vmem:[#allocation5 + $0x274] sm:$0xf0]  ;;  %v2169_v24 = vld [vmem:[#allocation5 + $0x28] sm:$0xf]  ;;  %v2570_v30 = vor.u32 %v3198_v23, %v2569_v21  ;;  %v2379_v23 = vld [vmem:[#allocation5 + $0x1d8] sm:$0xf0] }
  0x79   :  { %1462 = vmatpush.bf16.msra.mxu1 %v2534_v9  ;;  %v2585_v9 = vld [vmem:[#allocation5 + $0x368] sm:$0xf]  ;;  %v2458_v16 = vor.u32 %v3170_v7, %v2457_v6  ;;  %v3162_v32 = vld [vmem:[#allocation5 + $0x234] sm:$0xf0] }
  0x7a   :  { %1476 = vmatpush.bf16.msra.mxu3 %v2662_v12  ;;  %v2185_v12 = vld [vmem:[#allocation5 + $0x48] sm:$0xf]  ;;  %v3194_v34 = vld [vmem:[#allocation5 + $0x334] sm:$0xf0] }
  0x7b   :  { %1489 = vmatpush.bf16.msrb.mxu2 %v2806_v3  ;;  %1449 = vmatmul.bf16.vlgmr.msra.gmra.mxu0 %v3564_v54  ;;  %v2474_v3 = vor.u32 %v3174_v56, %v2473_v53  ;;  %v2425_v29 = vld [vmem:[#allocation5 + $0x228] sm:$0xf]  ;;  %v3250_v43 = vld [vmem:[#allocation5 + $0x4f4] sm:$0xf0] }
  0x7c   :  { %1504 = vmatpush.bf16.msrb.mxu0 %v2918_v18  ;;  %1463 = vmatmul.bf16.vlgmr.msra.gmra.mxu1 %v3568_v60  ;;  %v2553_v33 = vld [vmem:[#allocation5 + $0x328] sm:$0xf]  ;;  %v2426_v44 = vor.u32 %v3162_v32, %v2425_v29  ;;  %v3282_v46 = vld [vmem:[#allocation5 + $0x5f4] sm:$0xf0] }
  0x7d   :  { %1511 = vmatpush.bf16.msrb.mxu1 %v2266_v13  ;;  %1477 = vmatmul.bf16.vlgmr.msra.gmra.mxu3 %v3580_v37  ;;  %v3102_v13 = vld [vmem:[#allocation5 + $0x54] sm:$0xf0]  ;;  %v2153_v36 = vld [vmem:[#allocation5 + $0x8] sm:$0xf]  ;;  %v2554_v47 = vor.u32 %v3194_v34, %v2553_v33  ;;  %v3144_v34 = vld [vmem:[#allocation5 + $0x1ac] sm:$0xf] }
  0x7e   :  { %1525 = vmatpush.bf16.msrb.mxu3 %v2394_v17  ;;  %v2586_v17 = vor.u32 %v3202_v11, %v2585_v9  ;;  %v2186_v18 = vor.u32 %v3102_v13, %v2185_v12  ;;  %v2777_v41 = vld [vmem:[#allocation5 + $0x4e8] sm:$0xf]  ;;  %v3158_v51 = vld [vmem:[#allocation5 + $0x214] sm:$0xf0]  ;;  %v3152_v9 = vld [vmem:[#allocation5 + $0x1ec] sm:$0xf] }
  0x7f   :  { %1490 = vmatpush.bf16.msrb.mxu2 %v2790_v22  ;;  %v2314_v22 = vor.u32 %v3134_v15, %v2313_v14  ;;  %v2409_v49 = vld [vmem:[#allocation5 + $0x208] sm:$0xf]  ;;  %v2778_v56 = vor.u32 %v3250_v43, %v2777_v41  ;;  %v3246_v63 = vld [vmem:[#allocation5 + $0x4d4] sm:$0xf0]  ;;  %v3116_v11 = vld [vmem:[#allocation5 + $0xcc] sm:$0xf] }
  0x80   :  { %1539 = vmatpush.bf16.msra.mxu0 %v2522_v25  ;;  %v3098_v25 = vld [vmem:[#allocation5 + $0x34] sm:$0xf0]  ;;  %v2889_v0 = vld [vmem:[#allocation5 + $0x5c8] sm:$0xf]  ;;  %v2410_v1 = vor.u32 %v3158_v51, %v2409_v49  ;;  %v2251_v14 = vld [vmem:[#allocation5 + $0xd8] sm:$0xf0] }
  0x81   :  { %1512 = vmatpush.bf16.msrb.mxu1 %v2250_v27  ;;  %v3130_v27 = vld [vmem:[#allocation5 + $0x134] sm:$0xf0]  ;;  %v2745_v15 = vld [vmem:[#allocation5 + $0x4a8] sm:$0xf]  ;;  %v2254_v20 = vor.u32 %v3116_v11, %v2251_v14  ;;  %v2347_v49 = vld [vmem:[#allocation5 + $0x198] sm:$0xf0] }
  0x82   :  { %1526 = vmatpush.bf16.msrb.mxu3 %v2378_v31  ;;  %1491 = vmatmul.bf16.vlgmr.msrb.gmra.mxu2 %v3582_v42  ;;  %v2170_v31 = vor.u32 %v3098_v25, %v2169_v24  ;;  %v3278_v2 = vld [vmem:[#allocation5 + $0x5d4] sm:$0xf0]  ;;  %v3112_v24 = vld [vmem:[#allocation5 + $0xac] sm:$0xf]  ;;  %v2857_v29 = vld [vmem:[#allocation5 + $0x588] sm:$0xf] }
  0x83   :  { %1553 = vmatpush.bf16.msra.mxu2 %v2650_v26  ;;  %v2297_v26 = vld [vmem:[#allocation5 + $0x128] sm:$0xf]  ;;  %v2890_v12 = vor.u32 %v3278_v2, %v2889_v0  ;;  %v3234_v41 = vld [vmem:[#allocation5 + $0x474] sm:$0xf0]  ;;  %v3104_v51 = vld [vmem:[#allocation5 + $0x6c] sm:$0xf] }
  0x84   :  { %1540 = vmatpush.bf16.msra.mxu0 %v2506_v38  ;;  %v2298_v35 = vor.u32 %v3130_v27, %v2297_v26  ;;  %v3094_v38 = vld [vmem:[#allocation5 + $0x14] sm:$0xf0]  ;;  %v2235_v26 = vld [vmem:[#allocation5 + $0xb8] sm:$0xf0]  ;;  %v2729_v27 = vld [vmem:[#allocation5 + $0x488] sm:$0xf] }
  0x85   :  { %1513 = vmatpush.bf16.msrb.mxu1 %v2234_v40  ;;  %v3126_v40 = vld [vmem:[#allocation5 + $0x114] sm:$0xf0]  ;;  %v2154_v48 = vor.u32 %v3094_v38, %v2153_v36  ;;  %v2238_v32 = vor.u32 %v3112_v24, %v2235_v26  ;;  %v3108_v36 = vld [vmem:[#allocation5 + $0x8c] sm:$0xf]  ;;  %v2841_v43 = vld [vmem:[#allocation5 + $0x568] sm:$0xf] }
  0x86   :  { %1527 = vmatpush.bf16.msrb.mxu3 %v2362_v45  ;;  %v2905_v45 = vld [vmem:[#allocation5 + $0x5e8] sm:$0xf]  ;;  %v3136_v0 = vld [vmem:[#allocation5 + $0x16c] sm:$0xf]  ;;  %v2315_v14 = vld [vmem:[#allocation5 + $0x158] sm:$0xf0] }
  0x87   :  { %1554 = vmatpush.bf16.msra.mxu2 %v2634_v39  ;;  %v2281_v39 = vld [vmem:[#allocation5 + $0x108] sm:$0xf]  ;;  %v2906_v61 = vor.u32 %v3282_v46, %v2905_v45  ;;  %v3100_v2 = vld [vmem:[#allocation5 + $0x4c] sm:$0xf]  ;;  %v2651_v26 = vld [vmem:[#allocation5 + $0x3f8] sm:$0xf0] }
  0x88   :  { %1541 = vmatpush.bf16.msra.mxu0 %v2490_v52  ;;  %v2537_v52 = vld [vmem:[#allocation5 + $0x308] sm:$0xf]  ;;  %v2282_v53 = vor.u32 %v3126_v40, %v2281_v39  ;;  %v2219_v39 = vld [vmem:[#allocation5 + $0x98] sm:$0xf0]  ;;  %v3132_v11 = vld [vmem:[#allocation5 + $0x14c] sm:$0xf] }
  0x89   :  { %1514 = vmatpush.bf16.msrb.mxu1 %v2218_v58  ;;  %v3120_v58 = vld [vmem:[#allocation5 + $0xec] sm:$0xf]  ;;  %v2713_v40 = vld [vmem:[#allocation5 + $0x468] sm:$0xf]  ;;  %v2222_v46 = vor.u32 %v3108_v36, %v2219_v39  ;;  %v2318_v24 = vor.u32 %v3132_v11, %v2315_v14 }
  0x8a   :  { %1528 = vmatpush.bf16.msrb.mxu3 %v2346_v62  ;;  %v2761_v62 = vld [vmem:[#allocation5 + $0x4c8] sm:$0xf]  ;;  %v2270_v6 = vor.u32 %v3120_v58, %v2267_v59  ;;  %v3262_v59 = vld [vmem:[#allocation5 + $0x554] sm:$0xf0]  ;;  %v3180_v39 = vld [vmem:[#allocation5 + $0x2cc] sm:$0xf] }
  0x8b   :  { %1555 = vmatpush.bf16.msra.mxu2 %v2618_v57  ;;  %2928 = vmatmul.msk.bf16.vlgmr.msrb.gmra.mxu0 %vm1311_vm0, %v3576_v50  ;;  %v3190_v57 = vld [vmem:[#allocation5 + $0x314] sm:$0xf0]  ;;  %v2762_v7 = vor.u32 %v3246_v63, %v2761_v62  ;;  %v2825_v58 = vld [vmem:[#allocation5 + $0x548] sm:$0xf]  ;;  %v3204_v11 = vld [vmem:[#allocation5 + $0x38c] sm:$0xf] }
  0x8c   :  { %1542 = vmatpush.bf16.msra.mxu0 %v2474_v3  ;;  %v2921_v3 = vld [vmem:[#allocation5 + $0x608] sm:$0xf] }
  0x8d   :  { %1515 = vmatpush.bf16.msrb.mxu1 %v2202_v5  ;;  %v2538_v5 = vor.u32 %v3190_v57, %v2537_v52  ;;  %v3230_v57 = vld [vmem:[#allocation5 + $0x454] sm:$0xf0] }
  0x8e   :  { %1529 = vmatpush.bf16.msrb.mxu3 %v2330_v10  ;;  %v2395_v10 = vld [vmem:[#allocation5 + $0x1f8] sm:$0xf0] }
  0x8f   :  { %1556 = vmatpush.bf16.msra.mxu2 %v2602_v4  ;;  %v3286_v4 = vld [vmem:[#allocation5 + $0x614] sm:$0xf0]  ;;  %v2398_v19 = vor.u32 %v3152_v9, %v2395_v10 }
  0x90   :  { %1543 = vmatpush.bf16.msra.mxu0 %v2458_v16  ;;  %v2922_v13 = vor.u32 %v3286_v4, %v2921_v3  ;;  %v3242_v16 = vld [vmem:[#allocation5 + $0x4b4] sm:$0xf0]  ;;  %v2826_v3 = vor.u32 %v3262_v59, %v2825_v58  ;;  %v2187_v4 = vld [vmem:[#allocation5 + $0x58] sm:$0xf0]  ;;  %v3176_v58 = vld [vmem:[#allocation5 + $0x2ac] sm:$0xf] }
  0x91   :  { %1516 = vmatpush.bf16.msrb.mxu1 %v2186_v18  ;;  %v3274_v18 = vld [vmem:[#allocation5 + $0x5b4] sm:$0xf0]  ;;  %v2746_v21 = vor.u32 %v3242_v16, %v2745_v15  ;;  %v3096_v15 = vld [vmem:[#allocation5 + $0x2c] sm:$0xf]  ;;  %v2171_v16 = vld [vmem:[#allocation5 + $0x38] sm:$0xf0] }
  0x92   :  { %1530 = vmatpush.bf16.msrb.mxu3 %v2314_v22  ;;  %v3148_v22 = vld [vmem:[#allocation5 + $0x1cc] sm:$0xf]  ;;  %v3258_v9 = vld [vmem:[#allocation5 + $0x534] sm:$0xf0]  ;;  %v2491_v59 = vld [vmem:[#allocation5 + $0x2b8] sm:$0xf0] }
  0x93   :  { %1557 = vmatpush.bf16.msra.mxu2 %v2586_v17  ;;  %v2873_v17 = vld [vmem:[#allocation5 + $0x5a8] sm:$0xf] }
  0x94   :  { %1544 = vmatpush.bf16.msra.mxu0 %v2442_v28  ;;  %v2874_v25 = vor.u32 %v3274_v18, %v2873_v17  ;;  %v3238_v28 = vld [vmem:[#allocation5 + $0x494] sm:$0xf0]  ;;  %v2665_v18 = vld [vmem:[#allocation5 + $0x408] sm:$0xf] }
  0x95   :  { %1517 = vmatpush.bf16.msrb.mxu1 %v2170_v31  ;;  %v2382_v31 = vor.u32 %v3148_v22, %v2379_v23  ;;  %v2730_v33 = vor.u32 %v3238_v28, %v2729_v27  ;;  %v3184_v22 = vld [vmem:[#allocation5 + $0x2ec] sm:$0xf]  ;;  %v2523_v23 = vld [vmem:[#allocation5 + $0x2f8] sm:$0xf0]  ;;  %v2174_v27 = vor.u32 %v3096_v15, %v2171_v16 }
  0x96   :  { %1531 = vmatpush.bf16.msrb.mxu3 %v2298_v35  ;;  %v2363_v35 = vld [vmem:[#allocation5 + $0x1b8] sm:$0xf0]  ;;  %v3272_v16 = vld [vmem:[#allocation5 + $0x5ac] sm:$0xf] }
  0x97   :  { %1558 = vmatpush.bf16.msra.mxu2 %v2570_v30  ;;  %v3270_v30 = vld [vmem:[#allocation5 + $0x594] sm:$0xf0]  ;;  %v2366_v45 = vor.u32 %v3144_v34, %v2363_v35  ;;  %v2155_v34 = vld [vmem:[#allocation5 + $0x18] sm:$0xf0]  ;;  %v3248_v35 = vld [vmem:[#allocation5 + $0x4ec] sm:$0xf] }
  0x98   :  { %1545 = vmatpush.bf16.msra.mxu0 %v2426_v44  ;;  %v2858_v38 = vor.u32 %v3270_v30, %v2857_v29  ;;  %v3266_v44 = vld [vmem:[#allocation5 + $0x574] sm:$0xf0]  ;;  %v3128_v29 = vld [vmem:[#allocation5 + $0x12c] sm:$0xf]  ;;  %v2299_v30 = vld [vmem:[#allocation5 + $0x138] sm:$0xf0] }
  0x99   :  { %1518 = vmatpush.bf16.msrb.mxu1 %v2154_v48  ;;  %v3140_v48 = vld [vmem:[#allocation5 + $0x18c] sm:$0xf]  ;;  %v2842_v52 = vor.u32 %v3266_v44, %v2841_v43  ;;  %v2635_v44 = vld [vmem:[#allocation5 + $0x3d8] sm:$0xf0] }
  0x9a   :  { %1532 = vmatpush.bf16.msrb.mxu3 %v2282_v53  ;;  %v2203_v53 = vld [vmem:[#allocation5 + $0x78] sm:$0xf0]  ;;  %v3212_v43 = vld [vmem:[#allocation5 + $0x3cc] sm:$0xf] }
  0x9b   :  { %1559 = vmatpush.bf16.msra.mxu2 %v2554_v47  ;;  %v2714_v47 = vor.u32 %v3234_v41, %v2713_v40  ;;  %v2206_v62 = vor.u32 %v3104_v51, %v2203_v53  ;;  %v2507_v40 = vld [vmem:[#allocation5 + $0x2d8] sm:$0xf0]  ;;  %v2302_v41 = vor.u32 %v3128_v29, %v2299_v30  ;;  %v3280_v51 = vld [vmem:[#allocation5 + $0x5ec] sm:$0xf] }
  0x9c   :  { %1546 = vmatpush.bf16.msra.mxu0 %v2410_v1  ;;  %1519 = vmatmul.bf16.vlgmr.msrb.gmra.mxu1 %v3566_v55  ;;  %v2331_v1 = vld [vmem:[#allocation5 + $0x178] sm:$0xf0]  ;;  %v3244_v53 = vld [vmem:[#allocation5 + $0x4cc] sm:$0xf] }
  0x9d   :  { %1567 = vmatpush.bf16.msra.mxu1 %v2778_v56  ;;  %1533 = vmatmul.bf16.vlgmr.msrb.gmra.mxu3 %v3572_v8  ;;  %v2697_v56 = vld [vmem:[#allocation5 + $0x448] sm:$0xf]  ;;  %v2334_v10 = vor.u32 %v3136_v0, %v2331_v1  ;;  %v3232_v29 = vld [vmem:[#allocation5 + $0x46c] sm:$0xf] }
  0x9e   :  { %1581 = vmatpush.bf16.msra.mxu3 %v2906_v61  ;;  %v2350_v61 = vor.u32 %v3140_v48, %v2347_v49  ;;  %v2698_v63 = vor.u32 %v3230_v57, %v2697_v56  ;;  %v2510_v49 = vor.u32 %v3180_v39, %v2507_v40  ;;  %v2638_v56 = vor.u32 %v3212_v43, %v2635_v44  ;;  %v2763_v57 = vld [vmem:[#allocation5 + $0x4d8] sm:$0xf0]  ;;  %v3264_v39 = vld [vmem:[#allocation5 + $0x56c] sm:$0xf] }
  0x9f   :  { %1560 = vmatpush.bf16.msra.mxu2 %v2538_v5  ;;  %1547 = vmatmul.bf16.vlgmr.msra.gmra.mxu0 %v3564_v54  ;;  %v2681_v5 = vld [vmem:[#allocation5 + $0x428] sm:$0xf]  ;;  %v2766_v1 = vor.u32 %v3244_v53, %v2763_v57  ;;  %v2843_v40 = vld [vmem:[#allocation5 + $0x578] sm:$0xf0] }
  0xa0   :  { %1602 = vmatpush.bf16.msrb.mxu0 %v2922_v13  ;;  %v2699_v44 = vld [vmem:[#allocation5 + $0x458] sm:$0xf0] }
  0xa1   :  { %1568 = vmatpush.bf16.msra.mxu1 %v2762_v7  ;;  %v2809_v7 = vld [vmem:[#allocation5 + $0x528] sm:$0xf]  ;;  %v2827_v57 = vld [vmem:[#allocation5 + $0x558] sm:$0xf0] }
  0xa2   :  { %1582 = vmatpush.bf16.msra.mxu3 %v2890_v12  ;;  %1561 = vmatmul.bf16.vlgmr.msra.gmra.mxu2 %v3568_v60  ;;  %v2190_v12 = vor.u32 %v3100_v2, %v2187_v4  ;;  %v2810_v17 = vor.u32 %v3258_v9, %v2809_v7  ;;  %v2494_v2 = vor.u32 %v3176_v58, %v2491_v59  ;;  %v2891_v4 = vld [vmem:[#allocation5 + $0x5d8] sm:$0xf0]  ;;  %v3172_v9 = vld [vmem:[#allocation5 + $0x28c] sm:$0xf] }
  0xa3   :  { %1609 = vmatpush.bf16.msrb.mxu2 %v2270_v6  ;;  %v3226_v6 = vld [vmem:[#allocation5 + $0x434] sm:$0xf0]  ;;  %v2747_v7 = vld [vmem:[#allocation5 + $0x4b8] sm:$0xf0]  ;;  %v3224_v58 = vld [vmem:[#allocation5 + $0x42c] sm:$0xf] }
  0xa4   :  { %1623 = vmatpush.bf16.msra.mxu0 %v2398_v19  ;;  %v2682_v13 = vor.u32 %v3226_v6, %v2681_v5  ;;  %v3222_v19 = vld [vmem:[#allocation5 + $0x414] sm:$0xf0]  ;;  %v3240_v5 = vld [vmem:[#allocation5 + $0x4ac] sm:$0xf]  ;;  %v2683_v59 = vld [vmem:[#allocation5 + $0x438] sm:$0xf0] }
  0xa5   :  { %1569 = vmatpush.bf16.msra.mxu1 %v2746_v21  ;;  %v3254_v21 = vld [vmem:[#allocation5 + $0x514] sm:$0xf0]  ;;  %v2666_v28 = vor.u32 %v3222_v19, %v2665_v18  ;;  %v2750_v14 = vor.u32 %v3240_v5, %v2747_v7  ;;  %v3236_v18 = vld [vmem:[#allocation5 + $0x48c] sm:$0xf]  ;;  %v2923_v5 = vld [vmem:[#allocation5 + $0x618] sm:$0xf0] }
  0xa6   :  { %1583 = vmatpush.bf16.msra.mxu3 %v2874_v25  ;;  %v3216_v25 = vld [vmem:[#allocation5 + $0x3ec] sm:$0xf] }
  0xa7   :  { %1610 = vmatpush.bf16.msrb.mxu2 %v2254_v20  ;;  %v2793_v20 = vld [vmem:[#allocation5 + $0x508] sm:$0xf]  ;;  %v2654_v36 = vor.u32 %v3216_v25, %v2651_v26 }
  0xa8   :  { %1624 = vmatpush.bf16.msra.mxu0 %v2382_v31  ;;  %v2794_v31 = vor.u32 %v3254_v21, %v2793_v20  ;;  %v2731_v20 = vld [vmem:[#allocation5 + $0x498] sm:$0xf0]  ;;  %v3168_v21 = vld [vmem:[#allocation5 + $0x26c] sm:$0xf] }
  0xa9   :  { %1570 = vmatpush.bf16.msra.mxu1 %v2730_v33  ;;  %v3092_v33 = vld [vmem:[#allocation5 + $0xc] sm:$0xf]  ;;  %v2734_v25 = vor.u32 %v3236_v18, %v2731_v20  ;;  %v3294_v18 = vld [vmem:[#allocation8 + $0x38] sm:$0xff] }
  0xaa   :  { %1584 = vmatpush.bf16.msra.mxu3 %v2858_v38  ;;  %v2779_v38 = vld [vmem:[#allocation5 + $0x4f8] sm:$0xf0] }
  0xab   :  { %1611 = vmatpush.bf16.msrb.mxu2 %v2238_v32  ;;  %v2526_v32 = vor.u32 %v3184_v22, %v2523_v23  ;;  %v2782_v48 = vor.u32 %v3248_v35, %v2779_v38  ;;  %v2459_v22 = vld [vmem:[#allocation5 + $0x278] sm:$0xf0]  ;;  %v3200_v23 = vld [vmem:[#allocation5 + $0x36c] sm:$0xf] }
  0xac   :  { %1625 = vmatpush.bf16.msra.mxu0 %v2366_v45  ;;  %v2158_v45 = vor.u32 %v3092_v33, %v2155_v34  ;;  %v2462_v26 = vor.u32 %v3168_v21, %v2459_v22  ;;  %v2443_v33 = vld [vmem:[#allocation5 + $0x258] sm:$0xf0]  ;;  %v3196_v34 = vld [vmem:[#allocation5 + $0x34c] sm:$0xf] }
  0xad   :  { %1571 = vmatpush.bf16.msra.mxu1 %v2714_v47  ;;  %v2283_v47 = vld [vmem:[#allocation5 + $0x118] sm:$0xf0]  ;;  %v3252_v21 = vld [vmem:[#allocation5 + $0x50c] sm:$0xf] }
  0xae   :  { %1585 = vmatpush.bf16.msra.mxu3 %v2842_v52  ;;  %v2907_v52 = vld [vmem:[#allocation5 + $0x5f8] sm:$0xf0] }
  0xaf   :  { %1612 = vmatpush.bf16.msrb.mxu2 %v2222_v46  ;;  %2929 = vmatmul.msk.bf16.vlgmr.msrb.gmra.mxu0 %vm1311_vm0, %v3576_v50  ;;  %v3124_v46 = vld [vmem:[#allocation5 + $0x10c] sm:$0xf]  ;;  %v2910_v0 = vor.u32 %v3280_v51, %v2907_v52  ;;  %v2571_v35 = vld [vmem:[#allocation5 + $0x358] sm:$0xf0]  ;;  %v3604_v52 = vld [vmem:[#allocation7] sm:$0xf] }
  0xb0   :  { %1626 = vmatpush.bf16.msra.mxu0 %v2350_v61  ;;  %v2286_v61 = vor.u32 %v3124_v46, %v2283_v47  ;;  %v2574_v43 = vor.u32 %v3196_v34, %v2571_v35  ;;  %v2427_v46 = vld [vmem:[#allocation5 + $0x238] sm:$0xf0]  ;;  %v3192_v47 = vld [vmem:[#allocation5 + $0x32c] sm:$0xf] }
  0xb1   :  { %1572 = vmatpush.bf16.msra.mxu1 %v2698_v63  ;;  %v2619_v63 = vld [vmem:[#allocation5 + $0x3b8] sm:$0xf0]  ;;  %v3260_v51 = vld [vmem:[#allocation5 + $0x54c] sm:$0xf] }
  0xb2   :  { %1586 = vmatpush.bf16.msra.mxu3 %v2826_v3  ;;  %v3276_v3 = vld [vmem:[#allocation5 + $0x5cc] sm:$0xf]  ;;  %v2830_v7 = vor.u32 %v3260_v51, %v2827_v57  ;;  %v2795_v22 = vld [vmem:[#allocation5 + $0x518] sm:$0xf0] }
  0xb3   :  { %1613 = vmatpush.bf16.msrb.mxu2 %v2206_v62  ;;  %v3208_v62 = vld [vmem:[#allocation5 + $0x3ac] sm:$0xf] }
  0xb4   :  { %1627 = vmatpush.bf16.msra.mxu0 %v2334_v10  ;;  %v2622_v6 = vor.u32 %v3208_v62, %v2619_v63  ;;  %v2475_v10 = vld [vmem:[#allocation5 + $0x298] sm:$0xf0]  ;;  %v3156_v63 = vld [vmem:[#allocation5 + $0x20c] sm:$0xf] }
  0xb5   :  { %1573 = vmatpush.bf16.msra.mxu1 %v2682_v13  ;;  %v2894_v13 = vor.u32 %v3276_v3, %v2891_v4  ;;  %v2478_v15 = vor.u32 %v3172_v9, %v2475_v10  ;;  %v2539_v3 = vld [vmem:[#allocation5 + $0x318] sm:$0xf0]  ;;  %v3284_v4 = vld [vmem:[#allocation5 + $0x60c] sm:$0xf]  ;;  %v2686_v9 = vor.u32 %v3224_v58, %v2683_v59 }
  0xb6   :  { %1587 = vmatpush.bf16.msra.mxu3 %v2810_v17  ;;  %v2875_v17 = vld [vmem:[#allocation5 + $0x5b8] sm:$0xf0] }
  0xb7   :  { %1614 = vmatpush.bf16.msrb.mxu2 %v2190_v12  ;;  %v2603_v12 = vld [vmem:[#allocation5 + $0x398] sm:$0xf0] }
  0xb8   :  { %1628 = vmatpush.bf16.msra.mxu0 %v2318_v24  ;;  %v2606_v19 = vor.u32 %v3204_v11, %v2603_v12  ;;  %v2587_v24 = vld [vmem:[#allocation5 + $0x378] sm:$0xf0]  ;;  %v3256_v11 = vld [vmem:[#allocation5 + $0x52c] sm:$0xf] }
  0xb9   :  { %1574 = vmatpush.bf16.msra.mxu1 %v2666_v28  ;;  %v2859_v28 = vld [vmem:[#allocation5 + $0x598] sm:$0xf0]  ;;  %v2590_v30 = vor.u32 %v3200_v23, %v2587_v24  ;;  %v3293_v24 = vld [vmem:[#allocation8 + $0x30] sm:$0xff] }
  0xba   :  { %1588 = vmatpush.bf16.msra.mxu3 %v2794_v31  ;;  %v2715_v31 = vld [vmem:[#allocation5 + $0x478] sm:$0xf0] }
  0xbb   :  { %1615 = vmatpush.bf16.msrb.mxu2 %v2174_v27  ;;  %v3268_v27 = vld [vmem:[#allocation5 + $0x58c] sm:$0xf]  ;;  %v2811_v12 = vld [vmem:[#allocation5 + $0x538] sm:$0xf0] }
  0xbc   :  { %1629 = vmatpush.bf16.msra.mxu0 %v2302_v41  ;;  %1575 = vmatmul.bf16.vlgmr.msra.gmra.mxu1 %v3580_v37  ;;  %v3228_v41 = vld [vmem:[#allocation5 + $0x44c] sm:$0xf]  ;;  %v3298_v59 = vld [vmem:[#allocation8 + $0x58] sm:$0xff] }
  0xbd   :  { %1637 = vmatpush.bf16.msrb.mxu1 %v2526_v32  ;;  %1589 = vmatmul.bf16.vlgmr.msra.gmra.mxu3 %v3582_v42  ;;  %v3164_v32 = vld [vmem:[#allocation5 + $0x24c] sm:$0xf]  ;;  %v2702_v53 = vor.u32 %v3228_v41, %v2699_v44 }
  0xbe   :  { %1651 = vmatpush.bf16.msrb.mxu3 %v2654_v36  ;;  %v2718_v36 = vor.u32 %v3232_v29, %v2715_v31  ;;  %v2446_v38 = vor.u32 %v3164_v32, %v2443_v33  ;;  %v3292_v31 = vld [vmem:[#allocation8 + $0x28] sm:$0xff]  ;;  %v3302_v32 = vld [vmem:[#allocation8 + $0x78] sm:$0xff] }
  0xbf   :  { %1616 = vmatpush.bf16.msrb.mxu2 %v2158_v45  ;;  %v3160_v45 = vld [vmem:[#allocation5 + $0x22c] sm:$0xf] }
  0xc0   :  { %1630 = vmatpush.bf16.msra.mxu0 %v2286_v61  ;;  %v1324_v61 = vpop.f32.mrf.mxu0 }
  0xc1   :  { %1638 = vmatpush.bf16.msrb.mxu1 %v2510_v49  ;;  %v2846_v49 = vor.u32 %v3264_v39, %v2843_v40  ;;  %v3290_v40 = vld [vmem:[#allocation8 + $0x18] sm:$0xff] }
  0xc2   :  { %1652 = vmatpush.bf16.msrb.mxu3 %v2638_v56  ;;  %1617 = vmatmul.bf16.vlgmr.msrb.gmra.mxu2 %v3566_v55  ;;  %v2878_v55 = vor.u32 %v3272_v16, %v2875_v17  ;;  %v2430_v56 = vor.u32 %v3160_v45, %v2427_v46  ;;  %v2667_v16 = vld [vmem:[#allocation5 + $0x418] sm:$0xf0]  ;;  %v2926_v17 = vor.u32 %v3284_v4, %v2923_v5  ;;  %v3289_v45 = vld [vmem:[#allocation8 + $0x10] sm:$0xff]  ;;  %v324_v4 = vperm.slane %v3604_v52, 1  ;;  %v3295_v5 = vld [vmem:[#allocation8 + $0x40] sm:$0xff] }
  0xc3   :  { %1665 = vmatpush.bf16.msra.mxu2 %v2782_v48  ;;  %1631 = vmatmul.bf16.vlgmr.msra.gmra.mxu0 %v3572_v8  ;;  %v2862_v8 = vor.u32 %v3268_v27, %v2859_v28  ;;  %v2555_v48 = vld [vmem:[#allocation5 + $0x338] sm:$0xf0]  ;;  %v1366_v28 = vpop.f32.mrf.mxu3 }
  0xc4   :  { %1679 = vmatpush.bf16.msrb.mxu0 %v2910_v0  ;;  %v2558_v62 = vor.u32 %v3192_v47, %v2555_v48  ;;  %v2411_v0 = vld [vmem:[#allocation5 + $0x218] sm:$0xf0] }
  0xc5   :  { %1639 = vmatpush.bf16.msrb.mxu1 %v2494_v2  ;;  %v1338_v2 = vpop.f32.mrf.mxu1  ;;  %v2414_v10 = vor.u32 %v3156_v63, %v2411_v0 }
  0xc6   :  { %1653 = vmatpush.bf16.msrb.mxu3 %v2622_v6  ;;  %v1352_v6 = vpop.f32.mrf.mxu2 }
  0xc7   :  { %1666 = vmatpush.bf16.msra.mxu2 %v2766_v1  ;;  %v3188_v1 = vld [vmem:[#allocation5 + $0x30c] sm:$0xf] }
  0xc8   :  { %1680 = vmatpush.bf16.msrb.mxu0 %v2894_v13  ;;  %v323_v13 = vperm.slane %v3604_v52, 0 }
  0xc9   :  { %1640 = vmatpush.bf16.msrb.mxu1 %v2478_v15  ;;  %v3220_v15 = vld [vmem:[#allocation5 + $0x40c] sm:$0xf] }
  0xca   :  { %1654 = vmatpush.bf16.msrb.mxu3 %v2606_v19  ;;  %v2814_v19 = vor.u32 %v3256_v11, %v2811_v12  ;;  %v2670_v20 = vor.u32 %v3220_v15, %v2667_v16  ;;  %v1325_v23 = vadd.f32 %v1324_v61, %v323_v13 }
  0xcb   :  { %1667 = vmatpush.bf16.msra.mxu2 %v2750_v14  ;;  %v2542_v14 = vor.u32 %v3188_v1, %v2539_v3  ;;  %v1368_v41 = vpop.f32.mrf.mxu3  ;;  %v3296_v3 = vld [vmem:[#allocation8 + $0x48] sm:$0xff] }
  0xcc   :  { %1681 = vmatpush.bf16.msrb.mxu0 %v2878_v55  ;;  %v1326_v55 = vpop.f32.mrf.mxu0  ;;  %v1339_v27 = vadd.f32 %v1338_v2, %v1325_v23 }
  0xcd   :  { %1641 = vmatpush.bf16.msrb.mxu1 %v2462_v26  ;;  %v1340_v26 = vpop.f32.mrf.mxu1 }
  0xce   :  { %1655 = vmatpush.bf16.msrb.mxu3 %v2590_v30  ;;  %v1354_v29 = vpop.f32.mrf.mxu2  ;;  %v1327_v30 = vadd.f32 %v1326_v55, %v323_v13  ;;  %v1353_v33 = vadd.f32 %v1352_v6, %v1339_v27 }
  0xcf   :  { %1668 = vmatpush.bf16.msra.mxu2 %v2734_v25  ;;  %v2798_v25 = vor.u32 %v3252_v21, %v2795_v22 }
  0xd0   :  { %1682 = vmatpush.bf16.msrb.mxu0 %v2862_v8  ;;  %v1341_v34 = vadd.f32 %v1340_v26, %v1327_v30  ;;  %v3301_v8 = vld [vmem:[#allocation8 + $0x70] sm:$0xff] }
  0xd1   :  { %1642 = vmatpush.bf16.msrb.mxu1 %v2446_v38 }
  0xd2   :  { %1656 = vmatpush.bf16.msrb.mxu3 %v2574_v43  ;;  %v1355_v39 = vadd.f32 %v1354_v29, %v1341_v34  ;;  %v3308_v34 = vld [vmem:[#allocation8 + $0xa8] sm:$0xff] }
  0xd3   :  { %1669 = vmatpush.bf16.msra.mxu2 %v2718_v36  ;;  %v1367_v36 = vadd.f32 %v1366_v28, %v1353_v33  ;;  %v3309_v28 = vld [vmem:[#allocation8 + $0xb0] sm:$0xff] }
  0xd4   :  { %1683 = vmatpush.bf16.msrb.mxu0 %v2846_v49  ;;  %v1369_v44 = vadd.f32 %v1368_v41, %v1355_v39  ;;  %v3299_v49 = vld [vmem:[#allocation8 + $0x60] sm:$0xff]  ;;  %v3304_v41 = vld [vmem:[#allocation8 + $0x88] sm:$0xff] }
  0xd5   :  { %1643 = vmatpush.bf16.msrb.mxu1 %v2430_v56 }
  0xd6   :  { %1657 = vmatpush.bf16.msrb.mxu3 %v2558_v62  ;;  %v1408_v38 = vpop.f32.mrf.mxu2  ;;  %v3287_v62 = vld [vmem:[#allocation8] sm:$0xff] }
  0xd7   :  { %1670 = vmatpush.bf16.msra.mxu2 %v2702_v53  ;;  %v3288_v53 = vld [vmem:[#allocation8 + $0x8] sm:$0xff] }
  0xd8   :  { %1684 = vmatpush.bf16.msrb.mxu0 %v2830_v7  ;;  %v1380_v35 = vpop.f32.mrf.mxu0 }
  0xd9   :  { %1644 = vmatpush.bf16.msrb.mxu1 %v2414_v10  ;;  %v1381_v43 = vadd.f32 %v1380_v35, %v1367_v36  ;;  %v3306_v36 = vld [vmem:[#allocation8 + $0x98] sm:$0xff] }
  0xda   :  { %1658 = vmatpush.bf16.msrb.mxu3 %v2542_v14 }
  0xdb   :  { %1671 = vmatpush.bf16.msra.mxu2 %v2686_v9 }
  0xdc   :  { %1685 = vmatpush.bf16.msrb.mxu0 %v2814_v19  ;;  %1645 = vmatmul.bf16.vlgmr.msrb.gmra.mxu1 %v3564_v54  ;;  %v3291_v54 = vld [vmem:[#allocation8 + $0x20] sm:$0xff] }
  0xdd   :  { %1700 = vmatpush.bf16.msra.mxu1 %v2926_v17  ;;  %1659 = vmatmul.bf16.vlgmr.msrb.gmra.mxu3 %v3568_v60  ;;  %v1394_v60 = vpop.f32.mrf.mxu1 }
  0xde   :  { %1979 = vmatpush.bf16.msra.mxu3 %v3294_v18  ;;  %v1395_v46 = vadd.f32 %v1394_v60, %v1381_v43  ;;  %v1410_v57 = vpop.f32.mrf.mxu2  ;;  %v3307_v60 = vld [vmem:[#allocation8 + $0xa0] sm:$0xff] }
  0xdf   :  { %1672 = vmatpush.bf16.msra.mxu2 %v2670_v20  ;;  %v3303_v43 = vld [vmem:[#allocation8 + $0x80] sm:$0xff] }
  0xe0   :  { %1686 = vmatpush.bf16.msrb.mxu0 %v2798_v25  ;;  %v1409_v56 = vadd.f32 %v1408_v38, %v1395_v46  ;;  %v1422_v0 = vpop.f32.mrf.mxu3  ;;  %v3310_v25 = vld [vmem:[#allocation8 + $0xb8] sm:$0xff]  ;;  %v3305_v38 = vld [vmem:[#allocation8 + $0x90] sm:$0xff] }
  0xe1   :  { %1993 = vmatpush.bf16.msrb.mxu1 %v3302_v32  ;;  %v1423_v7 = vadd.f32 %v1422_v0, %v324_v4 }
  0xe2   :  { %1980 = vmatpush.bf16.msra.mxu3 %v3293_v24  ;;  %1673 = vmatmul.bf16.vlgmr.msra.gmra.mxu2 %v3580_v37  ;;  %v3300_v37 = vld [vmem:[#allocation8 + $0x68] sm:$0xff]  ;;  %v1707_v63 = vmax.f32 %v1409_v56, 0.0 }
  0xe3   :  { %1687 = vmatmul.bf16.vlgmr.msrb.gmra.mxu0 %v3582_v42  ;;  %v1382_v42 = vpop.f32.mrf.mxu0  ;;  %2007 = vmatpush.bf16.msrb.mxu2 %v3310_v25 }
  0xe4   :  { %v1383_v47 = vadd.f32 %v1382_v42, %v1369_v44  ;;  %v325_v44 = vperm.slane %v3604_v52, 2 }
  0xe5   :  { %1994 = vmatpush.bf16.msrb.mxu1 %v3301_v8  ;;  %v1396_v48 = vpop.f32.mrf.mxu1 }
  0xe6   :  { %1981 = vmatpush.bf16.msra.mxu3 %v3292_v31  ;;  %v1397_v51 = vadd.f32 %v1396_v48, %v1383_v47  ;;  %v1436_v2 = vpop.f32.mrf.mxu2  ;;  %v3318_v47 = vld [vmem:[#allocation8 + $0xf8] sm:$0xff]  ;;  %v3317_v48 = vld [vmem:[#allocation8 + $0xf0] sm:$0xff] }
  0xe7   :  { %v1437_v11 = vadd.f32 %v1436_v2, %v1423_v7  ;;  %2008 = vmatpush.bf16.msrb.mxu2 %v3309_v28  ;;  %2021 = vmatpush.bf16.msra.mxu0 %v3318_v47 }
  0xe8   :  { %v1411_v58 = vadd.f32 %v1410_v57, %v1397_v51  ;;  %v1424_v6 = vpop.f32.mrf.mxu3 }
  0xe9   :  { %1995 = vmatpush.bf16.msrb.mxu1 %v3300_v37  ;;  %v1425_v12 = vadd.f32 %v1424_v6, %v324_v4 }
  0xea   :  { %1982 = vmatpush.bf16.msra.mxu3 %v3291_v54  ;;  %v1711_v61 = vmax.f32 %v1411_v58, 0.0 }
  0xeb   :  { %2009 = vmatpush.bf16.msrb.mxu2 %v3308_v34  ;;  %2022 = vmatpush.bf16.msra.mxu0 %v3317_v48  ;;  %v3326_v48 = vld [vmem:[#allocation10 + $0x38] sm:$0xff] }
  0xec   :  { %2930 = vmatmul.msk.bf16.vlgmr.msra.gmra.mxu1 %vm1311_vm0, %v3576_v50  ;;  %v3297_v50 = vld [vmem:[#allocation8 + $0x50] sm:$0xff]  ;;  %v1715_v1 = vpack.c.bf16 %v1711_v61, %v1707_v63 }
  0xed   :  { %1996 = vmatpush.bf16.msrb.mxu1 %v3299_v49 }
  0xee   :  { %1983 = vmatpush.bf16.msra.mxu3 %v3290_v40  ;;  %v1438_v10 = vpop.f32.mrf.mxu2 }
  0xef   :  { %v1439_v15 = vadd.f32 %v1438_v10, %v1425_v12  ;;  %2010 = vmatpush.bf16.msrb.mxu2 %v3307_v60 }
  0xf1   :  { %1997 = vmatpush.bf16.msrb.mxu1 %v3298_v59 }
  0xf2   :  { %1984 = vmatpush.bf16.msra.mxu3 %v3289_v45 }
  0xf3   :  { %2011 = vmatpush.bf16.msrb.mxu2 %v3306_v36 }
  0xf5   :  { %1998 = vmatpush.bf16.msrb.mxu1 %v3297_v50 }
  0xf6   :  { %1985 = vmatpush.bf16.msra.mxu3 %v3288_v53 }
  0xf7   :  { %2012 = vmatpush.bf16.msrb.mxu2 %v3305_v38 }
  0xf8   :  { %v1450_v9 = vpop.f32.mrf.mxu0 }
  0xf9   :  { %1999 = vmatpush.bf16.msrb.mxu1 %v3296_v3  ;;  %v1464_v13 = vpop.f32.mrf.mxu1  ;;  %v1451_v14 = vadd.f32 %v1450_v9, %v1437_v11  ;;  %v3314_v9 = vld [vmem:[#allocation8 + $0xd8] sm:$0xff] }
  0xfa   :  { %1986 = vmatpush.bf16.msra.mxu3 %v3287_v62  ;;  %v3316_v62 = vld [vmem:[#allocation8 + $0xe8] sm:$0xff] }
  0xfb   :  { %v1465_v19 = vadd.f32 %v1464_v13, %v1451_v14  ;;  %2013 = vmatpush.bf16.msrb.mxu2 %v3304_v41  ;;  %2023 = vmatpush.bf16.msra.mxu0 %v3316_v62  ;;  %v3313_v14 = vld [vmem:[#allocation8 + $0xd0] sm:$0xff] }
  0xfd   :  { %1987 = vmatmul.bf16.vlgmr.msra.gmra.mxu3 %v1715_v1  ;;  %2000 = vmatpush.bf16.msrb.mxu1 %v3295_v5  ;;  %v3315_v1 = vld [vmem:[#allocation8 + $0xe0] sm:$0xff] }
  0xfe   :  { %2106 = vmatpush.bf16.msrb.mxu3 %v3326_v48 }
  0xff   :  { %2014 = vmatpush.bf16.msrb.mxu2 %v3303_v43  ;;  %2024 = vmatpush.bf16.msra.mxu0 %v3315_v1 }
 0x100   :  { %v1478_v16 = vpop.f32.mrf.mxu3  ;;  %v1452_v17 = vpop.f32.mrf.mxu0 }
 0x101   :  { %v1453_v20 = vadd.f32 %v1452_v17, %v1439_v15  ;;  %v1466_v21 = vpop.f32.mrf.mxu1  ;;  %v1479_v22 = vadd.f32 %v1478_v16, %v1465_v19 }
 0x103   :  { %v1467_v23 = vadd.f32 %v1466_v21, %v1453_v20  ;;  %2025 = vmatpush.bf16.msra.mxu0 %v3314_v9 }
 0x105   :  { %v1492_v18 = vpop.f32.mrf.mxu2 }
 0x106   :  { %v1493_v26 = vadd.f32 %v1492_v18, %v1479_v22  ;;  %v3312_v18 = vld [vmem:[#allocation8 + $0xc8] sm:$0xff]  ;;  %v3311_v22 = vld [vmem:[#allocation8 + $0xc0] sm:$0xff] }
 0x107   :  { %2026 = vmatpush.bf16.msra.mxu0 %v3313_v14 }
 0x108   :  { %v1480_v24 = vpop.f32.mrf.mxu3  ;;  %v1506_v55 = vpop.f32.mrf.mxu0 }
 0x109   :  { %v1481_v27 = vadd.f32 %v1480_v24, %v1467_v23  ;;  %v1507_v30 = vadd.f32 %v1506_v55, %v1493_v26  ;;  %v326_v23 = vperm.slane %v3604_v52, 3 }
 0x10b   :  { %v1708_v54 = vmax.f32 %v1507_v30, 0.0  ;;  %2027 = vmatpush.bf16.msra.mxu0 %v3312_v18 }
 0x10d   :  { %v1494_v29 = vpop.f32.mrf.mxu2 }
 0x10e   :  { %v1495_v31 = vadd.f32 %v1494_v29, %v1481_v27 }
 0x10f   :  { %2028 = vmatpush.bf16.msra.mxu0 %v3311_v22 }
 0x110   :  { %v1508_v32 = vpop.f32.mrf.mxu0 }
 0x111   :  { %v1509_v33 = vadd.f32 %v1508_v32, %v1495_v31 }
 0x113   :  { %v1712_v35 = vmax.f32 %v1509_v33, 0.0 }
 0x115   :  { %v1716_v8 = vpack.c.bf16 %v1712_v35, %v1708_v54 }
 0x117   :  { %2001 = vmatmul.bf16.vlgmr.msrb.gmra.mxu1 %v1716_v8 }
 0x119   :  { %v1520_v39 = vpop.f32.mrf.mxu1 }
 0x11a   :  { %v1521_v42 = vadd.f32 %v1520_v39, %v325_v44 }
 0x11c   :  { %v1548_v40 = vpop.f32.mrf.mxu0 }
 0x120   :  { %v1534_v37 = vpop.f32.mrf.mxu3 }
 0x121   :  { %v1522_v45 = vpop.f32.mrf.mxu1  ;;  %v1535_v53 = vadd.f32 %v1534_v37, %v1521_v42 }
 0x122   :  { %v1523_v56 = vadd.f32 %v1522_v45, %v325_v44 }
 0x123   :  { %v1549_v59 = vadd.f32 %v1548_v40, %v1535_v53  ;;  %v3323_v53 = vld [vmem:[#allocation10 + $0x20] sm:$0xff] }
 0x124   :  { %v1550_v46 = vpop.f32.mrf.mxu0 }
 0x125   :  { %v1562_v49 = vpop.f32.mrf.mxu2 }
 0x126   :  { %v1563_v0 = vadd.f32 %v1562_v49, %v1549_v59  ;;  %v3325_v49 = vld [vmem:[#allocation10 + $0x30] sm:$0xff]  ;;  %v3319_v59 = vld [vmem:[#allocation10] sm:$0xff] }
 0x127   :  { %2107 = vmatpush.bf16.msrb.mxu3 %v3325_v49 }
 0x128   :  { %v1536_v51 = vpop.f32.mrf.mxu3 }
 0x129   :  { %v1537_v61 = vadd.f32 %v1536_v51, %v1523_v56  ;;  %v3324_v51 = vld [vmem:[#allocation10 + $0x28] sm:$0xff]  ;;  %v3322_v56 = vld [vmem:[#allocation10 + $0x18] sm:$0xff] }
 0x12b   :  { %v1551_v50 = vadd.f32 %v1550_v46, %v1537_v61  ;;  %2108 = vmatpush.bf16.msrb.mxu3 %v3324_v51 }
 0x12c   :  { %v1604_v58 = vpop.f32.mrf.mxu0 }
 0x12d   :  { %v1564_v2 = vpop.f32.mrf.mxu2 }
 0x12e   :  { %v1565_v6 = vadd.f32 %v1564_v2, %v1551_v50 }
 0x12f   :  { %2109 = vmatpush.bf16.msrb.mxu3 %v3323_v53 }
 0x133   :  { %2110 = vmatpush.bf16.msrb.mxu3 %v3322_v56 }
 0x134   :  { %v1606_v5 = vpop.f32.mrf.mxu0 }
 0x139   :  { %v1576_v57 = vpop.f32.mrf.mxu1 }
 0x13a   :  { %v1577_v3 = vadd.f32 %v1576_v57, %v1563_v0  ;;  %v3321_v57 = vld [vmem:[#allocation10 + $0x10] sm:$0xff]  ;;  %v3341_v0 = vld [vmem:[%s3629_s4] ss:$0 sm:$0xff]  ;;  %s3506_s4 = smov [#allocation11]  }
 0x13b   :  { %2111 = vmatpush.bf16.msrb.mxu3 %v3321_v57  ;;  %s2126_s8 = sshll.u32 %s3506_s4, 4  ;;  %s2127_s8 = int_to_ptr.vmem [resolvable:$true] %s2126_s8 }
 0x140   :  { %v1590_v63 = vpop.f32.mrf.mxu3  ;;  %v1632_v20 = vpop.f32.mrf.mxu0 }
 0x141   :  { %v1578_v4 = vpop.f32.mrf.mxu1  ;;  %v1591_v7 = vadd.f32 %v1590_v63, %v1577_v3 }
 0x142   :  { %v1579_v10 = vadd.f32 %v1578_v4, %v1565_v6 }
 0x143   :  { %v1605_v12 = vadd.f32 %v1604_v58, %v1591_v7  ;;  %v3320_v58 = vld [vmem:[#allocation10 + $0x8] sm:$0xff] }
 0x144   :  { %2112 = vmatpush.bf16.msrb.mxu3 %v3320_v58 }
 0x145   :  { %v1709_v16 = vmax.f32 %v1605_v12, 0.0  ;;  %v1618_v19 = vpop.f32.mrf.mxu2 }
 0x146   :  { %v1619_v26 = vadd.f32 %v1618_v19, %v326_v23 }
 0x148   :  { %v1592_v11 = vpop.f32.mrf.mxu3  ;;  %v1634_v25 = vpop.f32.mrf.mxu0  ;;  %v1633_v27 = vadd.f32 %v1632_v20, %v1619_v26  ;;  %2113 = vmatpush.bf16.msrb.mxu3 %v3319_v59 }
 0x149   :  { %v1593_v13 = vadd.f32 %v1592_v11, %v1579_v10 }
 0x14b   :  { %v1607_v15 = vadd.f32 %v1606_v5, %v1593_v13 }
 0x14d   :  { %v1713_v17 = vmax.f32 %v1607_v15, 0.0  ;;  %v1620_v55 = vpop.f32.mrf.mxu2 }
 0x14e   :  { %v1621_v29 = vadd.f32 %v1620_v55, %v326_v23 }
 0x14f   :  { %v1717_v21 = vpack.c.bf16 %v1713_v17, %v1709_v16  ;;  %v3342_v17 = vld [vmem:[%s3631_s6] ss:$0 sm:$0xff] }
 0x150   :  { %v1635_v33 = vadd.f32 %v1634_v25, %v1621_v29 }
 0x151   :  { %2015 = vmatmul.bf16.vlgmr.msrb.gmra.mxu2 %v1717_v21 }
 0x159   :  { %v1646_v24 = vpop.f32.mrf.mxu1 }
 0x15a   :  { %v1647_v32 = vadd.f32 %v1646_v24, %v1633_v27 }
 0x160   :  { %v1660_v28 = vpop.f32.mrf.mxu3  ;;  %v1688_v34 = vpop.f32.mrf.mxu0 }
 0x161   :  { %v1648_v30 = vpop.f32.mrf.mxu1  ;;  %v1661_v54 = vadd.f32 %v1660_v28, %v1647_v32 }
 0x162   :  { %v1649_v35 = vadd.f32 %v1648_v30, %v1635_v33 }
 0x165   :  { %v1674_v31 = vpop.f32.mrf.mxu2 }
 0x166   :  { %v1675_v38 = vadd.f32 %v1674_v31, %v1661_v54 }
 0x168   :  { %v1662_v60 = vpop.f32.mrf.mxu3  ;;  %v1689_v40 = vadd.f32 %v1688_v34, %v1675_v38  ;;  %v1690_v41 = vpop.f32.mrf.mxu0 }
 0x169   :  { %v1663_v8 = vadd.f32 %v1662_v60, %v1649_v35  ;;  %v1702_v36 = vpop.f32.mrf.mxu1 }
 0x16a   :  { %v1703_v43 = vadd.f32 %v1702_v36, %v1689_v40 }
 0x16c   :  { %v1710_v46 = vmax.f32 %v1703_v43, 0.0 }
 0x16d   :  { %v1676_v39 = vpop.f32.mrf.mxu2 }
 0x16e   :  { %v1677_v52 = vadd.f32 %v1676_v39, %v1663_v8 }
 0x170   :  { %v1691_v37 = vadd.f32 %v1690_v41, %v1677_v52 }
 0x171   :  { %v1704_v44 = vpop.f32.mrf.mxu1 }
 0x172   :  { %v1705_v45 = vadd.f32 %v1704_v44, %v1691_v37 }
 0x174   :  { %v1714_v42 = vmax.f32 %v1705_v45, 0.0 }
 0x176   :  { %v1718_v47 = vpack.c.bf16 %v1714_v42, %v1710_v46 }
 0x178   :  { %2029 = vmatmul.bf16.vlgmr.msra.gmra.mxu0 %v1718_v47 }
 0x180   :  { %v1988_v61 = vpop.f32.mrf.mxu3 }
 0x181   :  { %v1989_v2 = vadd.f32 %v3341_v0, %v1988_v61 }
 0x188   :  { %v1990_v50 = vpop.f32.mrf.mxu3 }
 0x189   :  { %v1991_v4 = vadd.f32 %v3341_v0, %v1990_v50 }
 0x194   :  { %v2002_v62 = vpop.f32.mrf.mxu1 }
 0x195   :  { %v2003_v5 = vadd.f32 %v2002_v62, %v1989_v2 }
 0x19c   :  { %v2004_v3 = vpop.f32.mrf.mxu1 }
 0x19d   :  { %v2005_v7 = vadd.f32 %v2004_v3, %v1991_v4 }
 0x1d4   :  { %v2016_v63 = vpop.f32.mrf.mxu2 }
 0x1d5   :  { %v2017_v9 = vadd.f32 %v2016_v63, %v2003_v5 }
 0x1dc   :  { %v2018_v6 = vpop.f32.mrf.mxu2 }
 0x1dd   :  { %v2019_v10 = vadd.f32 %v2018_v6, %v2005_v7 }
 0x1f5   :  { %v2030_v1 = vpop.f32.mrf.mxu0 }
 0x1f6   :  { %v2031_v11 = vadd.f32 %v2030_v1, %v2017_v9 }
 0x1f8   :  { %v2035_v14 = vmax.f32 %v2031_v11, 0.0 }
 0x1fd   :  { %v2032_v12 = vpop.f32.mrf.mxu0 }
 0x1fe   :  { %v2033_v13 = vadd.f32 %v2032_v12, %v2019_v10 }
 0x200   :  { %v2036_v15 = vmax.f32 %v2033_v13, 0.0 }
 0x202   :  { %v2037_v16 = vpack.c.bf16 %v2036_v15, %v2035_v14 }
 0x204   :  { %2114 = vmatmul.bf16.vlgmr.msrb.gmra.mxu3 %v2037_v16 }
 0x287   :  { %v2115_v18 = vpop.f32.mrf.mxu3 }
 0x288   :  { %v2116_v19 = vadd.f32 %v3342_v17, %v2115_v18 }
 0x28a   :  { %2120 = vst [vmem:[#allocation11] sm:$0xff] %v2116_v19 }
 0x28f   :  { %v2117_v20 = vpop.f32.mrf.mxu3 }
 0x290   :  { %v2118_v21 = vadd.f32 %v3342_v17, %v2117_v20 }
 0x292   :  { %2121 = vst [vmem:[#allocation11 + $0x8] sm:$0xff] %v2118_v21 }
 0x293   :  { %2134 = dma.vmem_to_hbm [thread:$0]  %s2127_s8, 256, %s2129_s11, [#allocation4], %s3507_s12, %s3507_s12, %s3508_s13  }
 0x294   :  { %3493 = dma.done.wait [#allocation4], 256  }
 0x295   :  { %3494 = vsyncadd [#allocation4], 4294967040 }
 0x296   :  { %2139 = vsyncpa [#allocation3], 1 }
 0x297   :  { %2140 = vsyncpa [#allocation6], 1 }
 0x298   :  { %2141 = vsyncpa [#allocation9], 1 }
 0x299   :  { %2142 = vsyncpa [#allocation4], 1 }

</bundles_post_ra>
